<compile_context>
chip_gen: v6e
topology: v6e:2x2x1
jax: 0.10.0
libtpu: 0.0.40
codegen_flags: <defaults>
</compile_context>

<pallas_src>
import functools
import math

import jax
import jax.numpy as jnp
from jax.experimental import pallas as pl
from jax.experimental.pallas import tpu as pltpu

LANE = 128


def _round_up(v, m):
    return (v + m - 1) // m * m


# ----------------------------------------------------------------------------
# Pallas kernel: whole KAN forward (all layers fused), one N-tile per grid step
# ----------------------------------------------------------------------------
def kan_net_kernel(x_ref, *refs, meta, spline_order):
    """refs = (rep_0, rows_0, wbase_0, wspline_0, rep_1, ..., out_ref).

    meta: tuple of (in_p, g_total) per layer (static Python).
    rows layout (per layer, width w0 = (g_total-1)*in_p, zero padded to lanes):
      row 0: t_j              (left knot of degree-0 interval)
      row 1: t_{j+1}          (right knot of degree-0 interval)
      rows 2+4(k-1) .. +3 for level k: t_j, 1/(t_{j+k}-t_j), t_{j+k+1},
                                       1/(t_{j+k+1}-t_{j+1})
    """
    out_ref = refs[-1]
    layer_refs = refs[:-1]

    h = x_ref[...]                                        # (tile_n, in_p0) f32
    for l, (in_p, g_total) in enumerate(meta):
        rep_ref = layer_refs[4 * l + 0]                   # (in_p, w0_pad) f32 0/1
        rows_ref = layer_refs[4 * l + 1]                  # (rows_pad, w0_pad) f32
        wb_ref = layer_refs[4 * l + 2]                    # (in_p, out_pad) f32
        ws_ref = layer_refs[4 * l + 3]                    # (C*in_p, out_pad) bf16
        n0 = g_total - 1
        w0 = n0 * in_p

        x = h[:, :in_p]                                   # valid (+zero-padded) feats
        silu = x * jax.lax.logistic(x)

        # Replicate x across basis positions with an exact 0/1 matmul on the MXU
        # (lane = j*in_p + i  ->  x_i), avoiding lane-concatenate work on the VPU.
        x_rep = jnp.dot(x, rep_ref[...],
                        preferred_element_type=jnp.float32)[:, :w0]

        # Degree-0 bases: difference of float indicators (half-open intervals).
        bases = ((x_rep >= rows_ref[0:1, :w0]).astype(jnp.float32)
                 - (x_rep >= rows_ref[1:2, :w0]).astype(jnp.float32))

        # Cox-de Boor recursion on the densely packed slab; knot rows and guarded
        # reciprocal spacings are precomputed on the host (no in-kernel divides).
        for k in range(1, spline_order + 1):
            wk = (n0 - k) * in_p
            r = 2 + 4 * (k - 1)
            a = rows_ref[r + 0:r + 1, :wk]                # t_j
            ia = rows_ref[r + 1:r + 2, :wk]               # 1/(t_{j+k}-t_j)
            b = rows_ref[r + 2:r + 3, :wk]                # t_{j+k+1}
            ib = rows_ref[r + 3:r + 4, :wk]               # 1/(t_{j+k+1}-t_{j+1})
            xk = x_rep[:, :wk]
            bases = ((xk - a) * ia * bases[:, :wk]
                     + (b - xk) * ib * bases[:, in_p:wk + in_p])

        # Base path in f32 (accuracy), spline path in bf16 (bases live in [0,1]),
        # both with f32 accumulation.  No feature concat, no f32 staging slab.
        h = jnp.dot(silu, wb_ref[...], preferred_element_type=jnp.float32)
        h = h + jnp.dot(bases.astype(jnp.bfloat16), ws_ref[...],
                        preferred_element_type=jnp.float32)

    out_ref[...] = h.astype(out_ref.dtype)


# ----------------------------------------------------------------------------
# Wrapper: N-tiled parallel grid, weights VMEM-resident across tiles
# ----------------------------------------------------------------------------
def kan_forward(x, prepared, *, spline_order=3, tile_n=128):
    n, in_f = x.shape
    in_p0 = prepared[0]["in_p"]
    out_f_last = prepared[-1]["out_f"]
    out_pad_last = prepared[-1]["out_pad"]

    # Keep >=2 grid steps when n allows it (v7x: 2 TensorCores share the
    # "parallel" grid axis); bounded tile keeps the basis live-set spill-free.
    tile_n = int(max(8, min(tile_n, _round_up(-(-n // 2), 8))))
    n_pad = _round_up(n, tile_n)

    x_pad = jnp.zeros((n_pad, in_p0), jnp.float32).at[:n, :in_f].set(x)

    in_specs = [pl.BlockSpec((tile_n, in_p0), lambda i: (i, 0))]
    operands = [x_pad]
    meta = []
    for p in prepared:
        for name in ("rep", "rows", "w_base", "w_spline"):
            arr = p[name]
            in_specs.append(pl.BlockSpec(arr.shape, lambda i: (0, 0)))  # resident
            operands.append(arr)
        meta.append((p["in_p"], p["g_total"]))

    out = pl.pallas_call(
        functools.partial(kan_net_kernel, meta=tuple(meta),
                          spline_order=spline_order),
        out_shape=jax.ShapeDtypeStruct((n_pad, out_pad_last), jnp.float32),
        grid=(n_pad // tile_n,),
        in_specs=in_specs,
        out_specs=pl.BlockSpec((tile_n, out_pad_last), lambda i: (i, 0)),
        compiler_params=pltpu.CompilerParams(
            dimension_semantics=("parallel",),
            vmem_limit_bytes=48 * 1024 * 1024),
    )(*operands)
    return out[:n, :out_f_last]


# ----------------------------------------------------------------------------
# Parameter construction (deterministic synthetic init, torch-like layout)
# ----------------------------------------------------------------------------
def make_kan_params(key, layers_hidden, grid_size=5, spline_order=3,
                    scale_noise=0.1, grid_range=(-1.0, 1.0)):
    # TODO(synk): torch init uses curve2coeff (lstsq) for spline_weight; synthetic
    # uniform init is used here since forward semantics do not depend on init.
    params = []
    h = (grid_range[1] - grid_range[0]) / grid_size
    grid_1d = (jnp.arange(-spline_order, grid_size + spline_order + 1,
                          dtype=jnp.float32) * h + grid_range[0])
    for in_f, out_f in zip(layers_hidden, layers_hidden[1:]):
        key, k1, k2, k3 = jax.random.split(key, 4)
        grid_t = jnp.broadcast_to(grid_1d[:, None],
                                  (grid_1d.shape[0], in_f)).astype(jnp.float32)
        bound = 1.0 / math.sqrt(in_f)
        base_w = jax.random.uniform(k1, (out_f, in_f), jnp.float32, -bound, bound)
        spline_w = (jax.random.uniform(
            k2, (out_f, in_f, grid_size + spline_order), jnp.float32, -0.5, 0.5)
            * scale_noise / grid_size)
        spline_scaler = jax.random.uniform(k3, (out_f, in_f), jnp.float32,
                                           -bound, bound)
        params.append(dict(grid_t=grid_t, base_w=base_w,
                           spline_w=spline_w, spline_scaler=spline_scaler))
    return params


def prepare_kan_inference_params(params, *, spline_order=3, lane=LANE):
    """One-time host preprocessing: scale+transpose weights, pack knot rows and
    guarded reciprocal spacings, build the 0/1 replication matrix, pad, cast."""
    prepared = []
    for p in params:
        grid = p["grid_t"]                               # (G_total, in_f)
        base_w = p["base_w"]                             # (out_f, in_f)
        spline_w = p["spline_w"]                         # (out_f, in_f, C)
        scaler = p["spline_scaler"]                      # (out_f, in_f)
        out_f, in_f = base_w.shape
        g_total = grid.shape[0]
        coeff = spline_w.shape[-1]                       # grid_size + spline_order

        in_p = _round_up(in_f, 8)                        # feature padding (sublane)
        out_pad = _round_up(out_f, lane)                 # lane-dense output

        # Pad feature axis: valid (replicated) knots, zero weights -> exact.
        if in_p > in_f:
            grid_p = jnp.concatenate(
                [grid, jnp.broadcast_to(grid[:, :1], (g_total, in_p - in_f))],
                axis=1)
        else:
            grid_p = grid

        # Base weight (f32): (in_p, out_pad), zero padded.
        wb = jnp.zeros((in_p, out_pad), jnp.float32).at[:in_f, :out_f].set(base_w.T)

        # Scaled spline weight, row index = basis_j*in_p + feature_i (bf16).
        scaled = spline_w * scaler[..., None]            # (out_f, in_f, C)
        ws_full = jnp.zeros((coeff, in_p, out_pad), jnp.float32)
        ws_full = ws_full.at[:, :in_f, :out_f].set(jnp.transpose(scaled, (2, 1, 0)))
        ws = ws_full.reshape(coeff * in_p, out_pad).astype(jnp.bfloat16)

        # Packed knot rows + guarded reciprocal spacings (lane = j*in_p + i).
        n0 = g_total - 1
        w0 = n0 * in_p
        w0_pad = _round_up(w0, lane)

        def flat(a):
            v = a.reshape(-1)
            return jnp.zeros((w0_pad,), jnp.float32).at[:v.shape[0]].set(v)

        eps = 1e-12

        def safe_recip(d):
            safe = jnp.where(jnp.abs(d) > eps, d, 1.0)
            return jnp.where(jnp.abs(d) > eps, 1.0 / safe, 0.0)

        rows = [flat(grid_p[:-1]), flat(grid_p[1:])]
        for k in range(1, spline_order + 1):
            nk = n0 - k
            rows.append(flat(grid_p[0:nk]))                                  # t_j
            rows.append(flat(safe_recip(grid_p[k:k + nk] - grid_p[0:nk])))   # 1/(t_{j+k}-t_j)
            rows.append(flat(grid_p[k + 1:k + 1 + nk]))                      # t_{j+k+1}
            rows.append(flat(safe_recip(grid_p[k + 1:k + 1 + nk]
                                        - grid_p[1:1 + nk])))                # 1/(t_{j+k+1}-t_{j+1})
        n_rows = len(rows)
        rows_arr = jnp.zeros((_round_up(n_rows, 8), w0_pad),
                             jnp.float32).at[:n_rows].set(jnp.stack(rows))

        # 0/1 replication matrix: rep[i, j*in_p + i] = 1 (exact x broadcast on MXU).
        rep = jnp.zeros((in_p, w0_pad), jnp.float32).at[:, :w0].set(
            jnp.tile(jnp.eye(in_p, dtype=jnp.float32), (1, n0)))

        prepared.append(dict(rep=rep, rows=rows_arr, w_base=wb, w_spline=ws,
                             in_f=in_f, in_p=in_p, out_f=out_f, out_pad=out_pad,
                             g_total=g_total, coeff=coeff))
    return prepared


# ----------------------------------------------------------------------------
# Pure-JAX reference (mirrors the PyTorch forward) for correctness check
# ----------------------------------------------------------------------------
def _ref_b_splines(x, grid, spline_order):
    xe = x[:, :, None]
    bases = jnp.logical_and(xe >= grid[:, :-1], xe < grid[:, 1:]).astype(x.dtype)
    for k in range(1, spline_order + 1):
        bases = ((xe - grid[:, :-(k + 1)]) / (grid[:, k:-1] - grid[:, :-(k + 1)])
                 * bases[:, :, :-1]
                 + (grid[:, k + 1:] - xe) / (grid[:, k + 1:] - grid[:, 1:-k])
                 * bases[:, :, 1:])
    return bases


def kan_forward_ref(x, params, *, spline_order=3):
    # TODO(synk): update_grid (lstsq-based grid adaptation) and
    # regularization_loss are training-time utilities, not part of forward.
    for p in params:
        grid = p["grid_t"].T                                      # (in, G_total)
        base_out = jax.nn.silu(x) @ p["base_w"].T
        bases = _ref_b_splines(x, grid, spline_order)             # (N, in, C)
        scaled = p["spline_w"] * p["spline_scaler"][..., None]    # (out, in, C)
        spline_out = bases.reshape(x.shape[0], -1) @ scaled.reshape(
            scaled.shape[0], -1).T
        x = base_out + spline_out
    return x


# ----------------------------------------------------------------------------
if __name__ == "__main__":
    key = jax.random.PRNGKey(0)
    layers_hidden = [16, 32, 8]        # node-classification style MLP-KAN
    N = 64                             # number of nodes / samples

    kx, kp = jax.random.split(key)
    x = jax.random.normal(kx, (N, layers_hidden[0]), jnp.float32)
    params = make_kan_params(kp, layers_hidden)
    prepared = prepare_kan_inference_params(params, spline_order=3)

    out = kan_forward(x, prepared, spline_order=3)
    out = jax.block_until_ready(out)

    ref = kan_forward_ref(x, params, spline_order=3)
    assert out.shape == (N, layers_hidden[-1])
    max_diff = float(jnp.max(jnp.abs(out - ref)))
    # spline path uses bf16 MXU operands (f32 accumulation) -> relaxed tolerance.
    assert jnp.allclose(out, ref, atol=3e-2, rtol=3e-2), (
        f"mismatch vs JAX reference, max abs diff {max_diff}")

    print("KERNEL_OK")
</pallas_src>

<mosaic_0001>
module attributes {stable_mosaic.version = 11 : i64} {
  func.func @kan_net_kernel(%arg0: i32, %arg1: memref<32x16xf32, #tpu.memory_space<vmem>>, %arg2: memref<16x256xf32, #tpu.memory_space<vmem>>, %arg3: memref<16x256xf32, #tpu.memory_space<vmem>>, %arg4: memref<16x128xf32, #tpu.memory_space<vmem>>, %arg5: memref<128x128xbf16, #tpu.memory_space<vmem>>, %arg6: memref<32x384xf32, #tpu.memory_space<vmem>>, %arg7: memref<16x384xf32, #tpu.memory_space<vmem>>, %arg8: memref<32x128xf32, #tpu.memory_space<vmem>>, %arg9: memref<256x128xbf16, #tpu.memory_space<vmem>>, %arg10: memref<32x128xf32, #tpu.memory_space<vmem>>) attributes {dimension_semantics = [#tpu.dimension_semantics<parallel>], iteration_bounds = array<i64: 2>, scalar_prefetch = 0 : i64, scratch_operands = 0 : i64, tpu.core_type = #tpu.core_type<tc>, window_params = [{transform_indices = @transform_0, window_bounds = array<i64: 32, 16>}, {pipeline_mode = #tpu.pipeline_mode<synchronous>, transform_indices = @transform_1, window_bounds = array<i64: 16, 256>}, {pipeline_mode = #tpu.pipeline_mode<synchronous>, transform_indices = @transform_2, window_bounds = array<i64: 16, 256>}, {pipeline_mode = #tpu.pipeline_mode<synchronous>, transform_indices = @transform_3, window_bounds = array<i64: 16, 128>}, {pipeline_mode = #tpu.pipeline_mode<synchronous>, transform_indices = @transform_4, window_bounds = array<i64: 128, 128>}, {pipeline_mode = #tpu.pipeline_mode<synchronous>, transform_indices = @transform_5, window_bounds = array<i64: 32, 384>}, {pipeline_mode = #tpu.pipeline_mode<synchronous>, transform_indices = @transform_6, window_bounds = array<i64: 16, 384>}, {pipeline_mode = #tpu.pipeline_mode<synchronous>, transform_indices = @transform_7, window_bounds = array<i64: 32, 128>}, {pipeline_mode = #tpu.pipeline_mode<synchronous>, transform_indices = @transform_8, window_bounds = array<i64: 256, 128>}, {transform_indices = @transform_9, window_bounds = array<i64: 32, 128>}]} {
    %c0 = arith.constant 0 : index
    %c0_0 = arith.constant 0 : index
    %0 = vector.load %arg1[%c0, %c0_0] : memref<32x16xf32, #tpu.memory_space<vmem>>, vector<32x16xf32>
    %1 = arith.negf %0 : vector<32x16xf32>
    %2 = math.exp %1 : vector<32x16xf32>
    %cst = arith.constant 1.000000e+00 : f32
    %3 = vector.broadcast %cst : f32 to vector<32x16xf32>
    %4 = arith.addf %3, %2 : vector<32x16xf32>
    %5 = arith.divf %3, %4 : vector<32x16xf32>
    %6 = arith.mulf %0, %5 : vector<32x16xf32>
    %c0_1 = arith.constant 0 : index
    %c0_2 = arith.constant 0 : index
    %7 = vector.load %arg2[%c0_1, %c0_2] : memref<16x256xf32, #tpu.memory_space<vmem>>, vector<16x256xf32>
    %cst_3 = arith.constant dense<0.000000e+00> : vector<32x256xf32>
    %8 = tpu.matmul %0, %7, %cst_3 {dimension_numbers = #tpu.dot_dimension_numbers<[1], [0], [0], [1], [0, 0, 1, 1], [], []>} : vector<32x16xf32>, vector<16x256xf32>, vector<32x256xf32> -> vector<32x256xf32>
    %9 = vector.extract_strided_slice %8 {offsets = [0, 0], sizes = [32, 176], strides = [1, 1]} : vector<32x256xf32> to vector<32x176xf32>
    %c0_4 = arith.constant 0 : index
    %c0_5 = arith.constant 0 : index
    %10 = vector.load %arg3[%c0_4, %c0_5] : memref<16x256xf32, #tpu.memory_space<vmem>>, vector<1x176xf32>
    %11 = vector.broadcast %10 : vector<1x176xf32> to vector<32x176xf32>
    %12 = arith.cmpf oge, %9, %11 : vector<32x176xf32>
    %13 = arith.extui %12 : vector<32x176xi1> to vector<32x176xi32>
    %14 = arith.sitofp %13 : vector<32x176xi32> to vector<32x176xf32>
    %c1 = arith.constant 1 : index
    %c0_6 = arith.constant 0 : index
    %15 = vector.load %arg3[%c1, %c0_6] : memref<16x256xf32, #tpu.memory_space<vmem>>, vector<1x176xf32>
    %16 = vector.broadcast %15 : vector<1x176xf32> to vector<32x176xf32>
    %17 = arith.cmpf oge, %9, %16 : vector<32x176xf32>
    %18 = arith.extui %17 : vector<32x176xi1> to vector<32x176xi32>
    %19 = arith.sitofp %18 : vector<32x176xi32> to vector<32x176xf32>
    %20 = arith.subf %14, %19 : vector<32x176xf32>
    %c2 = arith.constant 2 : index
    %c0_7 = arith.constant 0 : index
    %21 = vector.load %arg3[%c2, %c0_7] : memref<16x256xf32, #tpu.memory_space<vmem>>, vector<1x160xf32>
    %c3 = arith.constant 3 : index
    %c0_8 = arith.constant 0 : index
    %22 = vector.load %arg3[%c3, %c0_8] : memref<16x256xf32, #tpu.memory_space<vmem>>, vector<1x160xf32>
    %c4 = arith.constant 4 : index
    %c0_9 = arith.constant 0 : index
    %23 = vector.load %arg3[%c4, %c0_9] : memref<16x256xf32, #tpu.memory_space<vmem>>, vector<1x160xf32>
    %c5 = arith.constant 5 : index
    %c0_10 = arith.constant 0 : index
    %24 = vector.load %arg3[%c5, %c0_10] : memref<16x256xf32, #tpu.memory_space<vmem>>, vector<1x160xf32>
    %25 = vector.extract_strided_slice %9 {offsets = [0, 0], sizes = [32, 160], strides = [1, 1]} : vector<32x176xf32> to vector<32x160xf32>
    %26 = vector.broadcast %21 : vector<1x160xf32> to vector<32x160xf32>
    %27 = arith.subf %25, %26 : vector<32x160xf32>
    %28 = vector.broadcast %22 : vector<1x160xf32> to vector<32x160xf32>
    %29 = arith.mulf %27, %28 : vector<32x160xf32>
    %30 = vector.extract_strided_slice %20 {offsets = [0, 0], sizes = [32, 160], strides = [1, 1]} : vector<32x176xf32> to vector<32x160xf32>
    %31 = arith.mulf %29, %30 : vector<32x160xf32>
    %32 = vector.broadcast %23 : vector<1x160xf32> to vector<32x160xf32>
    %33 = arith.subf %32, %25 : vector<32x160xf32>
    %34 = vector.broadcast %24 : vector<1x160xf32> to vector<32x160xf32>
    %35 = arith.mulf %33, %34 : vector<32x160xf32>
    %36 = vector.extract_strided_slice %20 {offsets = [0, 16], sizes = [32, 160], strides = [1, 1]} : vector<32x176xf32> to vector<32x160xf32>
    %37 = arith.mulf %35, %36 : vector<32x160xf32>
    %38 = arith.addf %31, %37 : vector<32x160xf32>
    %c6 = arith.constant 6 : index
    %c0_11 = arith.constant 0 : index
    %39 = vector.load %arg3[%c6, %c0_11] : memref<16x256xf32, #tpu.memory_space<vmem>>, vector<1x144xf32>
    %c7 = arith.constant 7 : index
    %c0_12 = arith.constant 0 : index
    %40 = vector.load %arg3[%c7, %c0_12] : memref<16x256xf32, #tpu.memory_space<vmem>>, vector<1x144xf32>
    %c8 = arith.constant 8 : index
    %c0_13 = arith.constant 0 : index
    %41 = vector.load %arg3[%c8, %c0_13] : memref<16x256xf32, #tpu.memory_space<vmem>>, vector<1x144xf32>
    %c9 = arith.constant 9 : index
    %c0_14 = arith.constant 0 : index
    %42 = vector.load %arg3[%c9, %c0_14] : memref<16x256xf32, #tpu.memory_space<vmem>>, vector<1x144xf32>
    %43 = vector.extract_strided_slice %9 {offsets = [0, 0], sizes = [32, 144], strides = [1, 1]} : vector<32x176xf32> to vector<32x144xf32>
    %44 = vector.broadcast %39 : vector<1x144xf32> to vector<32x144xf32>
    %45 = arith.subf %43, %44 : vector<32x144xf32>
    %46 = vector.broadcast %40 : vector<1x144xf32> to vector<32x144xf32>
    %47 = arith.mulf %45, %46 : vector<32x144xf32>
    %48 = vector.extract_strided_slice %38 {offsets = [0, 0], sizes = [32, 144], strides = [1, 1]} : vector<32x160xf32> to vector<32x144xf32>
    %49 = arith.mulf %47, %48 : vector<32x144xf32>
    %50 = vector.broadcast %41 : vector<1x144xf32> to vector<32x144xf32>
    %51 = arith.subf %50, %43 : vector<32x144xf32>
    %52 = vector.broadcast %42 : vector<1x144xf32> to vector<32x144xf32>
    %53 = arith.mulf %51, %52 : vector<32x144xf32>
    %54 = vector.extract_strided_slice %38 {offsets = [0, 16], sizes = [32, 144], strides = [1, 1]} : vector<32x160xf32> to vector<32x144xf32>
    %55 = arith.mulf %53, %54 : vector<32x144xf32>
    %56 = arith.addf %49, %55 : vector<32x144xf32>
    %c10 = arith.constant 10 : index
    %c0_15 = arith.constant 0 : index
    %57 = vector.load %arg3[%c10, %c0_15] : memref<16x256xf32, #tpu.memory_space<vmem>>, vector<1x128xf32>
    %c11 = arith.constant 11 : index
    %c0_16 = arith.constant 0 : index
    %58 = vector.load %arg3[%c11, %c0_16] : memref<16x256xf32, #tpu.memory_space<vmem>>, vector<1x128xf32>
    %c12 = arith.constant 12 : index
    %c0_17 = arith.constant 0 : index
    %59 = vector.load %arg3[%c12, %c0_17] : memref<16x256xf32, #tpu.memory_space<vmem>>, vector<1x128xf32>
    %c13 = arith.constant 13 : index
    %c0_18 = arith.constant 0 : index
    %60 = vector.load %arg3[%c13, %c0_18] : memref<16x256xf32, #tpu.memory_space<vmem>>, vector<1x128xf32>
    %61 = vector.extract_strided_slice %9 {offsets = [0, 0], sizes = [32, 128], strides = [1, 1]} : vector<32x176xf32> to vector<32x128xf32>
    %62 = vector.broadcast %57 : vector<1x128xf32> to vector<32x128xf32>
    %63 = arith.subf %61, %62 : vector<32x128xf32>
    %64 = vector.broadcast %58 : vector<1x128xf32> to vector<32x128xf32>
    %65 = arith.mulf %63, %64 : vector<32x128xf32>
    %66 = vector.extract_strided_slice %56 {offsets = [0, 0], sizes = [32, 128], strides = [1, 1]} : vector<32x144xf32> to vector<32x128xf32>
    %67 = arith.mulf %65, %66 : vector<32x128xf32>
    %68 = vector.broadcast %59 : vector<1x128xf32> to vector<32x128xf32>
    %69 = arith.subf %68, %61 : vector<32x128xf32>
    %70 = vector.broadcast %60 : vector<1x128xf32> to vector<32x128xf32>
    %71 = arith.mulf %69, %70 : vector<32x128xf32>
    %72 = vector.extract_strided_slice %56 {offsets = [0, 16], sizes = [32, 128], strides = [1, 1]} : vector<32x144xf32> to vector<32x128xf32>
    %73 = arith.mulf %71, %72 : vector<32x128xf32>
    %74 = arith.addf %67, %73 : vector<32x128xf32>
    %c0_19 = arith.constant 0 : index
    %c0_20 = arith.constant 0 : index
    %75 = vector.load %arg4[%c0_19, %c0_20] : memref<16x128xf32, #tpu.memory_space<vmem>>, vector<16x128xf32>
    %cst_21 = arith.constant dense<0.000000e+00> : vector<32x128xf32>
    %76 = tpu.matmul %6, %75, %cst_21 {dimension_numbers = #tpu.dot_dimension_numbers<[1], [0], [0], [1], [0, 0, 1, 1], [], []>} : vector<32x16xf32>, vector<16x128xf32>, vector<32x128xf32> -> vector<32x128xf32>
    %77 = arith.truncf %74 : vector<32x128xf32> to vector<32x128xbf16>
    %c0_22 = arith.constant 0 : index
    %c0_23 = arith.constant 0 : index
    %78 = vector.load %arg5[%c0_22, %c0_23] : memref<128x128xbf16, #tpu.memory_space<vmem>>, vector<128x128xbf16>
    %cst_24 = arith.constant dense<0.000000e+00> : vector<32x128xf32>
    %79 = tpu.matmul %77, %78, %cst_24 {dimension_numbers = #tpu.dot_dimension_numbers<[1], [0], [0], [1], [0, 0, 1, 1], [], []>} : vector<32x128xbf16>, vector<128x128xbf16>, vector<32x128xf32> -> vector<32x128xf32>
    %80 = arith.addf %76, %79 : vector<32x128xf32>
    %81 = vector.extract_strided_slice %80 {offsets = [0, 0], sizes = [32, 32], strides = [1, 1]} : vector<32x128xf32> to vector<32x32xf32>
    %82 = arith.negf %81 : vector<32x32xf32>
    %83 = math.exp %82 : vector<32x32xf32>
    %cst_25 = arith.constant 1.000000e+00 : f32
    %84 = vector.broadcast %cst_25 : f32 to vector<32x32xf32>
    %85 = arith.addf %84, %83 : vector<32x32xf32>
    %86 = arith.divf %84, %85 : vector<32x32xf32>
    %87 = arith.mulf %81, %86 : vector<32x32xf32>
    %c0_26 = arith.constant 0 : index
    %c0_27 = arith.constant 0 : index
    %88 = vector.load %arg6[%c0_26, %c0_27] : memref<32x384xf32, #tpu.memory_space<vmem>>, vector<32x384xf32>
    %cst_28 = arith.constant dense<0.000000e+00> : vector<32x384xf32>
    %89 = tpu.matmul %81, %88, %cst_28 {dimension_numbers = #tpu.dot_dimension_numbers<[1], [0], [0], [1], [0, 0, 1, 1], [], []>} : vector<32x32xf32>, vector<32x384xf32>, vector<32x384xf32> -> vector<32x384xf32>
    %90 = vector.extract_strided_slice %89 {offsets = [0, 0], sizes = [32, 352], strides = [1, 1]} : vector<32x384xf32> to vector<32x352xf32>
    %c0_29 = arith.constant 0 : index
    %c0_30 = arith.constant 0 : index
    %91 = vector.load %arg7[%c0_29, %c0_30] : memref<16x384xf32, #tpu.memory_space<vmem>>, vector<1x352xf32>
    %92 = vector.broadcast %91 : vector<1x352xf32> to vector<32x352xf32>
    %93 = arith.cmpf oge, %90, %92 : vector<32x352xf32>
    %94 = arith.extui %93 : vector<32x352xi1> to vector<32x352xi32>
    %95 = arith.sitofp %94 : vector<32x352xi32> to vector<32x352xf32>
    %c1_31 = arith.constant 1 : index
    %c0_32 = arith.constant 0 : index
    %96 = vector.load %arg7[%c1_31, %c0_32] : memref<16x384xf32, #tpu.memory_space<vmem>>, vector<1x352xf32>
    %97 = vector.broadcast %96 : vector<1x352xf32> to vector<32x352xf32>
    %98 = arith.cmpf oge, %90, %97 : vector<32x352xf32>
    %99 = arith.extui %98 : vector<32x352xi1> to vector<32x352xi32>
    %100 = arith.sitofp %99 : vector<32x352xi32> to vector<32x352xf32>
    %101 = arith.subf %95, %100 : vector<32x352xf32>
    %c2_33 = arith.constant 2 : index
    %c0_34 = arith.constant 0 : index
    %102 = vector.load %arg7[%c2_33, %c0_34] : memref<16x384xf32, #tpu.memory_space<vmem>>, vector<1x320xf32>
    %c3_35 = arith.constant 3 : index
    %c0_36 = arith.constant 0 : index
    %103 = vector.load %arg7[%c3_35, %c0_36] : memref<16x384xf32, #tpu.memory_space<vmem>>, vector<1x320xf32>
    %c4_37 = arith.constant 4 : index
    %c0_38 = arith.constant 0 : index
    %104 = vector.load %arg7[%c4_37, %c0_38] : memref<16x384xf32, #tpu.memory_space<vmem>>, vector<1x320xf32>
    %c5_39 = arith.constant 5 : index
    %c0_40 = arith.constant 0 : index
    %105 = vector.load %arg7[%c5_39, %c0_40] : memref<16x384xf32, #tpu.memory_space<vmem>>, vector<1x320xf32>
    %106 = vector.extract_strided_slice %90 {offsets = [0, 0], sizes = [32, 320], strides = [1, 1]} : vector<32x352xf32> to vector<32x320xf32>
    %107 = vector.broadcast %102 : vector<1x320xf32> to vector<32x320xf32>
    %108 = arith.subf %106, %107 : vector<32x320xf32>
    %109 = vector.broadcast %103 : vector<1x320xf32> to vector<32x320xf32>
    %110 = arith.mulf %108, %109 : vector<32x320xf32>
    %111 = vector.extract_strided_slice %101 {offsets = [0, 0], sizes = [32, 320], strides = [1, 1]} : vector<32x352xf32> to vector<32x320xf32>
    %112 = arith.mulf %110, %111 : vector<32x320xf32>
    %113 = vector.broadcast %104 : vector<1x320xf32> to vector<32x320xf32>
    %114 = arith.subf %113, %106 : vector<32x320xf32>
    %115 = vector.broadcast %105 : vector<1x320xf32> to vector<32x320xf32>
    %116 = arith.mulf %114, %115 : vector<32x320xf32>
    %117 = vector.extract_strided_slice %101 {offsets = [0, 32], sizes = [32, 320], strides = [1, 1]} : vector<32x352xf32> to vector<32x320xf32>
    %118 = arith.mulf %116, %117 : vector<32x320xf32>
    %119 = arith.addf %112, %118 : vector<32x320xf32>
    %c6_41 = arith.constant 6 : index
    %c0_42 = arith.constant 0 : index
    %120 = vector.load %arg7[%c6_41, %c0_42] : memref<16x384xf32, #tpu.memory_space<vmem>>, vector<1x288xf32>
    %c7_43 = arith.constant 7 : index
    %c0_44 = arith.constant 0 : index
    %121 = vector.load %arg7[%c7_43, %c0_44] : memref<16x384xf32, #tpu.memory_space<vmem>>, vector<1x288xf32>
    %c8_45 = arith.constant 8 : index
    %c0_46 = arith.constant 0 : index
    %122 = vector.load %arg7[%c8_45, %c0_46] : memref<16x384xf32, #tpu.memory_space<vmem>>, vector<1x288xf32>
    %c9_47 = arith.constant 9 : index
    %c0_48 = arith.constant 0 : index
    %123 = vector.load %arg7[%c9_47, %c0_48] : memref<16x384xf32, #tpu.memory_space<vmem>>, vector<1x288xf32>
    %124 = vector.extract_strided_slice %90 {offsets = [0, 0], sizes = [32, 288], strides = [1, 1]} : vector<32x352xf32> to vector<32x288xf32>
    %125 = vector.broadcast %120 : vector<1x288xf32> to vector<32x288xf32>
    %126 = arith.subf %124, %125 : vector<32x288xf32>
    %127 = vector.broadcast %121 : vector<1x288xf32> to vector<32x288xf32>
    %128 = arith.mulf %126, %127 : vector<32x288xf32>
    %129 = vector.extract_strided_slice %119 {offsets = [0, 0], sizes = [32, 288], strides = [1, 1]} : vector<32x320xf32> to vector<32x288xf32>
    %130 = arith.mulf %128, %129 : vector<32x288xf32>
    %131 = vector.broadcast %122 : vector<1x288xf32> to vector<32x288xf32>
    %132 = arith.subf %131, %124 : vector<32x288xf32>
    %133 = vector.broadcast %123 : vector<1x288xf32> to vector<32x288xf32>
    %134 = arith.mulf %132, %133 : vector<32x288xf32>
    %135 = vector.extract_strided_slice %119 {offsets = [0, 32], sizes = [32, 288], strides = [1, 1]} : vector<32x320xf32> to vector<32x288xf32>
    %136 = arith.mulf %134, %135 : vector<32x288xf32>
    %137 = arith.addf %130, %136 : vector<32x288xf32>
    %c10_49 = arith.constant 10 : index
    %c0_50 = arith.constant 0 : index
    %138 = vector.load %arg7[%c10_49, %c0_50] : memref<16x384xf32, #tpu.memory_space<vmem>>, vector<1x256xf32>
    %c11_51 = arith.constant 11 : index
    %c0_52 = arith.constant 0 : index
    %139 = vector.load %arg7[%c11_51, %c0_52] : memref<16x384xf32, #tpu.memory_space<vmem>>, vector<1x256xf32>
    %c12_53 = arith.constant 12 : index
    %c0_54 = arith.constant 0 : index
    %140 = vector.load %arg7[%c12_53, %c0_54] : memref<16x384xf32, #tpu.memory_space<vmem>>, vector<1x256xf32>
    %c13_55 = arith.constant 13 : index
    %c0_56 = arith.constant 0 : index
    %141 = vector.load %arg7[%c13_55, %c0_56] : memref<16x384xf32, #tpu.memory_space<vmem>>, vector<1x256xf32>
    %142 = vector.extract_strided_slice %90 {offsets = [0, 0], sizes = [32, 256], strides = [1, 1]} : vector<32x352xf32> to vector<32x256xf32>
    %143 = vector.broadcast %138 : vector<1x256xf32> to vector<32x256xf32>
    %144 = arith.subf %142, %143 : vector<32x256xf32>
    %145 = vector.broadcast %139 : vector<1x256xf32> to vector<32x256xf32>
    %146 = arith.mulf %144, %145 : vector<32x256xf32>
    %147 = vector.extract_strided_slice %137 {offsets = [0, 0], sizes = [32, 256], strides = [1, 1]} : vector<32x288xf32> to vector<32x256xf32>
    %148 = arith.mulf %146, %147 : vector<32x256xf32>
    %149 = vector.broadcast %140 : vector<1x256xf32> to vector<32x256xf32>
    %150 = arith.subf %149, %142 : vector<32x256xf32>
    %151 = vector.broadcast %141 : vector<1x256xf32> to vector<32x256xf32>
    %152 = arith.mulf %150, %151 : vector<32x256xf32>
    %153 = vector.extract_strided_slice %137 {offsets = [0, 32], sizes = [32, 256], strides = [1, 1]} : vector<32x288xf32> to vector<32x256xf32>
    %154 = arith.mulf %152, %153 : vector<32x256xf32>
    %155 = arith.addf %148, %154 : vector<32x256xf32>
    %c0_57 = arith.constant 0 : index
    %c0_58 = arith.constant 0 : index
    %156 = vector.load %arg8[%c0_57, %c0_58] : memref<32x128xf32, #tpu.memory_space<vmem>>, vector<32x128xf32>
    %cst_59 = arith.constant dense<0.000000e+00> : vector<32x128xf32>
    %157 = tpu.matmul %87, %156, %cst_59 {dimension_numbers = #tpu.dot_dimension_numbers<[1], [0], [0], [1], [0, 0, 1, 1], [], []>} : vector<32x32xf32>, vector<32x128xf32>, vector<32x128xf32> -> vector<32x128xf32>
    %158 = arith.truncf %155 : vector<32x256xf32> to vector<32x256xbf16>
    %c0_60 = arith.constant 0 : index
    %c0_61 = arith.constant 0 : index
    %159 = vector.load %arg9[%c0_60, %c0_61] : memref<256x128xbf16, #tpu.memory_space<vmem>>, vector<256x128xbf16>
    %cst_62 = arith.constant dense<0.000000e+00> : vector<32x128xf32>
    %160 = tpu.matmul %158, %159, %cst_62 {dimension_numbers = #tpu.dot_dimension_numbers<[1], [0], [0], [1], [0, 0, 1, 1], [], []>} : vector<32x256xbf16>, vector<256x128xbf16>, vector<32x128xf32> -> vector<32x128xf32>
    %161 = arith.addf %157, %160 : vector<32x128xf32>
    %c0_63 = arith.constant 0 : index
    %c0_64 = arith.constant 0 : index
    %162 = vector.load %arg10[%c0_63, %c0_64] : memref<32x128xf32, #tpu.memory_space<vmem>>, vector<32x128xf32>
    tpu.vector_store %arg10[%c0_63, %c0_64], %161 {strides = array<i32>} : memref<32x128xf32, #tpu.memory_space<vmem>>, vector<32x128xf32>,
    return
  }
  func.func @transform_0(%arg0: i32) -> (i32, i32) {
    %c0_i32 = arith.constant 0 : i32
    %c0_i32_0 = arith.constant 0 : i32
    return %arg0, %c0_i32 : i32, i32
  }
  func.func @transform_1(%arg0: i32) -> (i32, i32) {
    %c0_i32 = arith.constant 0 : i32
    %c0_i32_0 = arith.constant 0 : i32
    %c0_i32_1 = arith.constant 0 : i32
    return %c0_i32, %c0_i32_0 : i32, i32
  }
  func.func @transform_2(%arg0: i32) -> (i32, i32) {
    %c0_i32 = arith.constant 0 : i32
    %c0_i32_0 = arith.constant 0 : i32
    %c0_i32_1 = arith.constant 0 : i32
    return %c0_i32, %c0_i32_0 : i32, i32
  }
  func.func @transform_3(%arg0: i32) -> (i32, i32) {
    %c0_i32 = arith.constant 0 : i32
    %c0_i32_0 = arith.constant 0 : i32
    %c0_i32_1 = arith.constant 0 : i32
    return %c0_i32, %c0_i32_0 : i32, i32
  }
  func.func @transform_4(%arg0: i32) -> (i32, i32) {
    %c0_i32 = arith.constant 0 : i32
    %c0_i32_0 = arith.constant 0 : i32
    %c0_i32_1 = arith.constant 0 : i32
    return %c0_i32, %c0_i32_0 : i32, i32
  }
  func.func @transform_5(%arg0: i32) -> (i32, i32) {
    %c0_i32 = arith.constant 0 : i32
    %c0_i32_0 = arith.constant 0 : i32
    %c0_i32_1 = arith.constant 0 : i32
    return %c0_i32, %c0_i32_0 : i32, i32
  }
  func.func @transform_6(%arg0: i32) -> (i32, i32) {
    %c0_i32 = arith.constant 0 : i32
    %c0_i32_0 = arith.constant 0 : i32
    %c0_i32_1 = arith.constant 0 : i32
    return %c0_i32, %c0_i32_0 : i32, i32
  }
  func.func @transform_7(%arg0: i32) -> (i32, i32) {
    %c0_i32 = arith.constant 0 : i32
    %c0_i32_0 = arith.constant 0 : i32
    %c0_i32_1 = arith.constant 0 : i32
    return %c0_i32, %c0_i32_0 : i32, i32
  }
  func.func @transform_8(%arg0: i32) -> (i32, i32) {
    %c0_i32 = arith.constant 0 : i32
    %c0_i32_0 = arith.constant 0 : i32
    %c0_i32_1 = arith.constant 0 : i32
    return %c0_i32, %c0_i32_0 : i32, i32
  }
  func.func @transform_9(%arg0: i32) -> (i32, i32) {
    %c0_i32 = arith.constant 0 : i32
    %c0_i32_0 = arith.constant 0 : i32
    return %arg0, %c0_i32 : i32, i32
  }
}

</mosaic_0001>

<bundles_post_ra>
// kernel: tpu_custom_call.1
= control target key start
LH: loop header
LB: loop body
LE: loop exit
PB: predicated region body
PF: predicated region fallthrough
CT: control target
= control target key end

     0   :  { %14 = vsyncpa [#allocation3], 0  ;;  %s4466_s0 = inlined_call_operand.vmem [shape: f32[64,16], index: 0, kind: input, shape index: {}]   ;;  %s4467_s1 = inlined_call_operand.hbm [shape: f32[16,256], index: 1, kind: input, shape index: {}]   ;;  %s4468_s2 = inlined_call_operand.hbm [shape: f32[16,256], index: 2, kind: input, shape index: {}]   ;;  %s4469_s3 = inlined_call_operand.vmem [shape: f32[16,128], index: 3, kind: input, shape index: {}]   ;;  %s4470_s4 = inlined_call_operand.vmem [shape: bf16[128,128], index: 4, kind: input, shape index: {}]   ;;  %s4471_s5 = inlined_call_operand.hbm [shape: f32[32,384], index: 5, kind: input, shape index: {}]   ;;  %s4472_s6 = inlined_call_operand.hbm [shape: f32[16,384], index: 6, kind: input, shape index: {}]   ;;  %s4473_s7 = inlined_call_operand.hbm [shape: f32[32,128], index: 7, kind: input, shape index: {}]   ;;  %s4474_s8 = inlined_call_operand.hbm [shape: bf16[256,128], index: 8, kind: input, shape index: {}]   ;;  %s4475_s9 = inlined_call_operand.hbm [shape: f32[64,128], index: 9, kind: output, shape index: {}]  }
   0x1   :  { %15 = vsyncpa [#allocation6], 0 }
   0x2   :  { %16 = vsyncpa [#allocation9], 0 }
   0x3   :  { %17 = vsyncpa [#allocation12], 0 }
   0x4   :  { %18 = vsyncpa [#allocation4], 0 }
   0x5   :  { %20 = vsyncpa [#allocation4 + $0x1], 0  ;;  %s3270_s30 = smov 0   ;;  %s3272_s10 = smov 0  }
   0x6   :  { %s3274_s11 = smov 0   ;;  %s3276_s12 = smov 0  }
   0x7 LB: > { %4480 = sst [smem:[#allocation19_spill]] %s3194_s11  ;;  %s3291_s13 = sadd.s32 4294967295, %s3198_s12   ;;  %s3198_s12 = sphi %s3276_s12, %s4503_s12   ;;  %s3194_s11 = sphi %s3274_s11, %s4500_s11   ;;  %s3190_s10 = sphi %s3272_s10, %s4502_s10   ;;  %s3186_s30 = sphi %s3270_s30, %s4501_s30  }
   0x8   : > { %s2562_s14 = sadd.s32 4294967294, %s3198_s12   ;;  %s3295_s15 = sadd.s32 1, %s3198_s12  }
   0x9   : > { %s227_s16 = sadd.s32 1, %s3194_s11  ;;  %s224_s17 = ssub.s32 %s3198_s12, %s3295_s15 }
   0xa   : > { %p237_p0 = scmp.ne.s32.totalorder %s3194_s11, %s3190_s10  ;;  %p225_p1 = scmp.eq.s32.totalorder %s224_s17, 0 }
   0xb   : > { %p238_p2 = scmp.eq.s32.totalorder %s3291_s13, 1  ;;  %p243_p3 = scmp.ne.s32.totalorder %s3190_s10, %s3186_s30 }
   0xc   : > { %p244_p4 = scmp.eq.s32.totalorder %s2562_s14, 1  ;;  %p2563_p7 = scmp.ge.s32.totalorder %s3198_s12, 1 }
   0xd   : > { %s3306_s18 = scalar_select %p225_p1, %s3194_s11, %s227_s16  }
   0xe   : > { %p3308_p5 = por %p238_p2, %p237_p0  ;;  %p3312_p6 = por %p244_p4, %p243_p3 }
   0xf   : > { %4481 = sst [smem:[#allocation20_spill]] %s3306_s18  ;;  %p251_p8 = scmp.lt.s32.totalorder %s3198_s12, 3 }
  0x10   : > { %p4479_p9 = scmp.eq.s32.totalorder %s3291_s13, 0  ;;  %s3200_s22 = smov [#allocation5]  }
  0x11   : > { %p3319_p10 = pnand %p2563_p7, %p251_p8  ;;  %s276_s23 = sshll.u32 %s3200_s22, 4  ;;  %s277_s23 = int_to_ptr.vmem [resolvable:$true] %s276_s23 }
  0x12   : > { %s3201_s25 = smov [#allocation8]   ;;  %s2977_s28 = scalar_lea.vmem %s277_s23, 512 }
  0x13   : > { %p2823_p11 = pneg %p3319_p10  ;;  %s308_s26 = sshll.u32 %s3201_s25, 4  ;;  %s309_s26 = int_to_ptr.vmem [resolvable:$true] %s308_s26 }
  0x14   : > { %p2978_p0 = scmp.ne.s32.totalorder %s277_s23, %s2977_s28  ;;  %p2985_p3 = scmp.lt.s32.totalorder %s277_s23, %s277_s23 }
  0x15   : > { %p3327_p12 = pnand %p4479_p9, %p2823_p11  ;;  %p2986_p4 = scmp.lt.s32.totalorder %s2977_s28, %s2977_s28 }
  0x17   : > { %p3333_p13 = pneg %p3327_p12  ;;  %p2987_p7 = por %p2986_p4, %p2985_p3 }
  0x19   : > { %p2980_p1 = pnand %p2978_p0, %p3333_p13 }
  0x1b   : > { %p2981_p2 = pneg %p2980_p1 }
  0x1d   : > { %p2988_p8 = pnand %p2987_p7, %p2981_p2 }
  0x1f   : > { %2991 = shalt.err (!%p2988_p8)
}
  0x20   : > { %s3202_s29 = smov 256   ;;  %s3203_s14 = smov 16  }
  0x21   : > { %2829 = dma.hbm_to_vmem [thread:$0]  (!%p3327_p12), %s4468_s2, 512, %s277_s23, [#allocation6], %s3202_s29, %s3202_s29, %s3203_s14  }
  0x22   : > { %s3204_s22 = smov [#allocation2]   ;;  %s3003_s18 = scalar_lea.vmem %s309_s26, 768 }
  0x23   : > { %s263_s25 = sshll.u32 %s3204_s22, 4  ;;  %p3004_p11 = scmp.ne.s32.totalorder %s309_s26, %s3003_s18  ;;  %s264_s25 = int_to_ptr.vmem [resolvable:$true] %s263_s25 }
  0x24   : > { %p3011_p2 = scmp.lt.s32.totalorder %s309_s26, %s309_s26  ;;  %p3012_p3 = scmp.lt.s32.totalorder %s3003_s18, %s3003_s18 }
  0x25   : > { %p3006_p0 = pnand %p3004_p11, %p3333_p13 }
  0x26   : > { %p3013_p4 = por %p3012_p3, %p3011_p2 }
  0x27   : > { %p3007_p1 = pneg %p3006_p0 }
  0x29   : > { %p3014_p7 = pnand %p3013_p4, %p3007_p1 }
  0x2b   : > { %3017 = shalt.err (!%p3014_p7)
}
  0x2c   : > { %s4477_s28 = smov 384   ;;  %s4478_s11 = smov 24  }
  0x2d   : > { %2835 = dma.hbm_to_vmem [thread:$0]  (!%p3327_p12), %s4472_s6, 768, %s309_s26, [#allocation9], %s4477_s28, %s4477_s28, %s4478_s11  }
  0x2e   : > { %s3029_s17 = scalar_lea.vmem %s264_s25, 512  ;;  %p3037_p1 = scmp.lt.s32.totalorder %s264_s25, %s264_s25 }
  0x2f   : > { %p3030_p8 = scmp.ne.s32.totalorder %s264_s25, %s3029_s17  ;;  %p3038_p2 = scmp.lt.s32.totalorder %s3029_s17, %s3029_s17 }
  0x31   : > { %p3032_p11 = pnand %p3030_p8, %p3333_p13  ;;  %p3039_p3 = por %p3038_p2, %p3037_p1 }
  0x33   : > { %p3033_p0 = pneg %p3032_p11 }
  0x35   : > { %p3040_p4 = pnand %p3039_p3, %p3033_p0 }
  0x37   : > { %3043 = shalt.err (!%p3040_p4)
}
  0x38   : > { %2826 = dma.hbm_to_vmem [thread:$0]  (!%p3327_p12), %s4467_s1, 512, %s264_s25, [#allocation3], %s3202_s29, %s3202_s29, %s3203_s14  }
  0x39   : > { %s3207_s26 = smov [#allocation7]   ;;  %s3208_s16 = smov [#allocation10]  }
  0x3a   : > { %s295_s23 = sshll.u32 %s3207_s26, 4  ;;  %s321_s28 = sshll.u32 %s3208_s16, 4  ;;  %s296_s23 = int_to_ptr.vmem [resolvable:$true] %s295_s23  ;;  %s322_s28 = int_to_ptr.vmem [resolvable:$true] %s321_s28 }
  0x3b   : > { %s3055_s11 = scalar_lea.vmem %s296_s23, 1536  ;;  %p3063_p0 = scmp.lt.s32.totalorder %s296_s23, %s296_s23 }
  0x3c   : > { %p3056_p7 = scmp.ne.s32.totalorder %s296_s23, %s3055_s11  ;;  %p3064_p1 = scmp.lt.s32.totalorder %s3055_s11, %s3055_s11 }
  0x3e   : > { %p3058_p8 = pnand %p3056_p7, %p3333_p13  ;;  %p3065_p2 = por %p3064_p1, %p3063_p0 }
  0x40   : > { %p3059_p11 = pneg %p3058_p8 }
  0x42   : > { %p3066_p3 = pnand %p3065_p2, %p3059_p11 }
  0x44   : > { %3069 = shalt.err (!%p3066_p3)
}
  0x45   : > { %s4487_s17 = smov 24   ;;  %s4488_s18 = smov 384  }
  0x46   : > { %2832 = dma.hbm_to_vmem [thread:$0]  (!%p3327_p12), %s4471_s5, 1536, %s296_s23, [#allocation6], %s4488_s18, %s4488_s18, %s4487_s17  }
  0x47   : > { %s3081_s25 = scalar_lea.vmem %s322_s28, 512  ;;  %p3089_p9 = scmp.lt.s32.totalorder %s322_s28, %s322_s28 }
  0x48   : > { %p3082_p4 = scmp.ne.s32.totalorder %s322_s28, %s3081_s25  ;;  %p3090_p0 = scmp.lt.s32.totalorder %s3081_s25, %s3081_s25 }
  0x4a   : > { %p3084_p7 = pnand %p3082_p4, %p3333_p13  ;;  %p3091_p11 = por %p3090_p0, %p3089_p9 }
  0x4c   : > { %p3085_p8 = pneg %p3084_p7 }
  0x4e   : > { %p3092_p1 = pnand %p3091_p11, %p3085_p8 }
  0x50   : > { %3095 = shalt.err (!%p3092_p1)
}
  0x51   : > { %s3209_s11 = smov 128   ;;  %s3210_s22 = smov 8  }
  0x52   : > { %2838 = dma.hbm_to_vmem [thread:$0]  (!%p3327_p12), %s4473_s7, 512, %s322_s28, [#allocation9], %s3209_s11, %s3209_s11, %s3210_s22  }
  0x53   : > { %s3211_s23 = smov [#allocation11]  }
  0x54   : > { %s334_s17 = sshll.u32 %s3211_s23, 4  ;;  %s335_s17 = int_to_ptr.vmem [resolvable:$true] %s334_s17 }
  0x55   : > { %s3107_s18 = scalar_lea.vmem %s335_s17, 2048  ;;  %p3115_p9 = scmp.lt.s32.totalorder %s335_s17, %s335_s17 }
  0x56   : > { %p3108_p2 = scmp.ne.s32.totalorder %s335_s17, %s3107_s18  ;;  %p3116_p7 = scmp.lt.s32.totalorder %s3107_s18, %s3107_s18 }
  0x58   : > { %p3110_p3 = pnand %p3108_p2, %p3333_p13  ;;  %p3117_p8 = por %p3116_p7, %p3115_p9 }
  0x5a   : > { %p3111_p4 = pneg %p3110_p3 }
  0x5c   : > { %p3118_p0 = pnand %p3117_p8, %p3111_p4 }
  0x5e   : > { %3121 = shalt.err (!%p3118_p0)
}
  0x5f   : > { %s3212_s29 = smov 64   ;;  %s3213_s14 = smov 4  }
  0x60   : > { %2841 = dma.hbm_to_vmem [thread:$0]  (!%p3327_p12), %s4474_s8, 2048, %s335_s17, [#allocation12], %s3212_s29, %s3212_s29, %s3213_s14  }
  0x61   : > { %359 = sbr.rel (%p3319_p10) target bundleno = 1701 (0x6a5), region = 56 }
  0x66   : > { %p4489_p11 = scmp.eq.s32.totalorder %s3291_s13, 0 }
  0x68   : > { %3165 = dma.done.wait (%p4489_p11), [#allocation3], 512   ;;  %p4490_p13 = pmov %p4489_p11 }
  0x69   : > { %p4491_p1 = pmov %p4489_p11 }
  0x6a   : > { %3167 = vsyncadd (%p4490_p13), [#allocation3], 4294966784 }
  0x6b   : > { %3169 = dma.done.wait (%p4491_p1), [#allocation6], 2048   ;;  %p4492_p2 = pmov %p4491_p1 }
  0x6c   : > { %p4493_p3 = pmov %p4491_p1 }
  0x6d   : > { %3171 = vsyncadd (%p4492_p2), [#allocation6], 4294965248 }
  0x6e   : > { %3173 = dma.done.wait (%p4493_p3), [#allocation9], 1280   ;;  %p4494_p12 = pmov %p4491_p1 }
  0x6f   : > { %p4495_p10 = pmov %p4491_p1 }
  0x70   : > { %3175 = vsyncadd (%p4494_p12), [#allocation9], 4294966016 }
  0x71   : > { %3177 = dma.done.wait (%p4495_p10), [#allocation12], 2048   ;;  %p4496_p4 = pmov %p4491_p1 }
  0x72   : > { %s2579_s21 = sshll.u32 %s3291_s13, 2  ;;  %v3214_v0 = vmov 0.0   ;;  %v458_v1 = vld [vmem:[#allocation2 + $0x18] sm:$0xff]  ;;  %v457_v2 = vld [vmem:[#allocation2 + $0x10] sm:$0xff]  ;;  %v456_v3 = vld [vmem:[#allocation2 + $0x8] sm:$0xff]  ;;  %vm459_vm0 = vcmask 130048   ;;  %v563_v9 = vlaneseq }
  0x73   : > { %3179 = vsyncadd (%p4496_p4), [#allocation12], 4294965248  ;;  %536 = vmatprep.mubr.f32.mxu1 %v3214_v0  ;;  %p416_p9 = scmp.lt.s32.totalorder %s2579_s21, 7  ;;  %500 = vmatprep.subr.mxu1 %v458_v1  ;;  %v455_v4 = vld [vmem:[#allocation2] sm:$0xff]  ;;  %s3215_s22 = smov 112  }
  0x74   : > { %501 = vmatpush1.msra.mxu1 %v457_v2  ;;  %v3433_v10 = vshrl.u32 %v563_v9, 7  ;;  %v561_v11 = vld [vmem:[#allocation5] ss:$8 sm:$0x3]  ;;  %s412_s26 = sand.u32 1, %s3190_s10   ;;  %s2678_s28 = sshll.u32 %s3291_s13, 9 }
  0x75   : > { %s4505_s21 = smov (!%p416_p9, %s2579_s21), 7  ;;  %502 = vmatprep.subr.mxu1 %v456_v3  ;;  %v598_v13 = vld [vmem:[#allocation5 + $0x1] ss:$8 sm:$0x3]  ;;  %s4422_s23 = scalar_lea.hbm %s4475_s9, %s2678_s28 }
  0x76   : > { %s2580_s24 = sshll.u32 %s4505_s21, 3  ;;  %503 = vmatpush1.msra.mxu1 %v455_v4  ;;  %v3436_v12 = vsub.s32 0, %v3433_v10  ;;  %v643_v14 = vld [vmem:[#allocation5 + $0x2] ss:$8 sm:$0x3]  ;;  %v3439_v15 = vsub.s32 1, %v3433_v10 }
  0x77   : > { %s419_s11 = scalar_lea.vmem %s4466_s0, %s2580_s24  ;;  %v645_v16 = vld [vmem:[#allocation5 + $0x3] ss:$8 sm:$0x3]  ;;  %s2578_s21 = sshll.u32 %s412_s26, 5 }
  0x78   : > { %v3414_v5 = vld [vmem:[%s419_s11] sm:$0xff]  ;;  %v3416_v6 = vld [vmem:[%s419_s11 + $0x8] sm:$0xff]  ;;  %v3421_v7 = vld [vmem:[%s419_s11 + $0x10] sm:$0xff]  ;;  %v3442_v17 = vrot.slane %v561_v11, %v3436_v12  ;;  %v3445_v18 = vrot.slane %v598_v13, %v3436_v12  ;;  %v3448_v19 = vrot.slane %v643_v14, %v3436_v12  ;;  %v3451_v20 = vrot.slane %v561_v11, %v3439_v15  ;;  %s414_s24 = scalar_lea.vmem [#allocation13], %s2578_s21  ;;  %s4426_s17 = scalar_lea.sflag [#allocation4], %s412_s26 }
  0x79   : > { %2585 = vmatmul.mubr.msk.f32.vlgmr.msra.gmra.mxu1 %vm459_vm0, %v3414_v5  ;;  %v3426_v8 = vld [vmem:[%s419_s11 + $0x18] sm:$0xff]  ;;  %v3454_v21 = vrot.slane %v598_v13, %v3439_v15  ;;  %v3457_v22 = vrot.slane %v645_v16, %v3436_v12  ;;  %v3462_v24 = vrot.slane %v643_v14, %v3439_v15  ;;  %v3475_v29 = vrot.slane %v645_v16, %v3439_v15  ;;  %s2440_s27 = sshll.u32 %s414_s24, 4  ;;  %s3217_s13 = smov [#allocation13]   ;;  %s4417_s27 = int_to_ptr.vmem [resolvable:$true] %s2440_s27 }
  0x7a   : > { %542 = vmatprep.mubr.f32.mxu1 %v3214_v0  ;;  %s3122_s18 = scalar_lea.vmem %s4417_s27, 512  ;;  %s3126_s29 = sshll.u32 %s3217_s13, 4  ;;  %s3127_s29 = int_to_ptr.vmem [resolvable:$false] %s3126_s29 }
  0x7b   : > { %p3123_p7 = scmp.ne.s32.totalorder %s4417_s27, %s3122_s18  ;;  %s3128_s14 = scalar_lea.vmem %s3127_s29, 1024 }
  0x7c   : > { %p3129_p11 = scmp.lt.s32.totalorder %s4417_s27, %s3127_s29  ;;  %p3130_p13 = scmp.lt.s32.totalorder %s3128_s14, %s3122_s18 }
  0x7d   : > { %2586 = vmatmul.mubr.msk.f32.gmra.mxu1 %vm459_vm0, %v3416_v6  ;;  %p3124_p8 = pnand %p3123_p7, %p3308_p5 }
  0x7e   : > { %548 = vmatprep.mubr.f32.mxu1 %v3214_v0  ;;  %p3131_p1 = por %p3130_p13, %p3129_p11 }
  0x7f   : > { %p3125_p0 = pneg %p3124_p8 }
  0x81   : > { %2587 = vmatmul.mubr.msk.f32.gmra.mxu1 %vm459_vm0, %v3421_v7  ;;  %p3132_p2 = pnand %p3131_p1, %p3125_p0 }
  0x82   : > { %554 = vmatprep.mubr.f32.mxu1 %v3214_v0 }
  0x85   : > { %2588 = vmatmul.mubr.msk.f32.gmra.mxu1 %vm459_vm0, %v3426_v8 }
 0x139   : > { %v3459_v23 = vpop.f32.mrf.mxu1 }
 0x13a   : > { %vm573_vm1 = vcmp.ge.f32.partialorder %v3459_v23, %v3442_v17  ;;  %vm610_vm2 = vcmp.ge.f32.partialorder %v3459_v23, %v3445_v18  ;;  %v661_v25 = vsub.f32 %v3459_v23, %v3448_v19 }
 0x13b   : > { %v3470_v26 = vpop.f32.mrf.mxu1  ;;  %v2589_v27 = vsel %vm573_vm1, 1.0, %v3214_v0  ;;  %v2597_v28 = vsel %vm610_vm2, 1.0, %v3214_v0  ;;  %vm758_vm2 = vcmask 916480  }
 0x13c   : > { %v634_v30 = vsub.f32 %v2589_v27, %v2597_v28  ;;  %v680_v31 = vmul.f32 %v3457_v22, %v661_v25  ;;  %vm574_vm3 = vcmp.ge.f32.partialorder %v3470_v26, %v3451_v20  ;;  %vm611_vm4 = vcmp.ge.f32.partialorder %v3470_v26, %v3454_v21  ;;  %v647_v27 = vld [vmem:[#allocation5 + $0x4] ss:$8 sm:$0x3] }
 0x13d   : > { %v3482_v32 = vpop.f32.mrf.mxu1  ;;  %v2590_v33 = vsel %vm574_vm3, 1.0, %v3214_v0  ;;  %v2598_v34 = vsel %vm611_vm4, 1.0, %v3214_v0  ;;  %v662_v35 = vsub.f32 %v3470_v26, %v3462_v24  ;;  %v3576_v28 = vrot.slane %v647_v27, %v3439_v15 }
 0x13e   : > { %742 = vrot.lane.b32.xlu0 %v634_v30, %s3215_s22  ;;  %v3489_v36 = vmul.f32 %v680_v31, %v634_v30  ;;  %v635_v37 = vsub.f32 %v2590_v33, %v2598_v34  ;;  %vm575_vm5 = vcmp.ge.f32.partialorder %v3482_v32, %v3442_v17  ;;  %vm612_vm6 = vcmp.ge.f32.partialorder %v3482_v32, %v3445_v18  ;;  %v788_v31 = vld [vmem:[#allocation5 + $0x6] ss:$8 sm:$0x3] }
 0x13f   : > { %v3495_v38 = vpop.f32.mrf.mxu1  ;;  %v2591_v39 = vsel %vm575_vm5, 1.0, %v3214_v0  ;;  %v2599_v40 = vsel %vm612_vm6, 1.0, %v3214_v0  ;;  %v663_v41 = vsub.f32 %v3482_v32, %v3448_v19  ;;  %v681_v42 = vmul.f32 %v3475_v29, %v662_v35 }
 0x140   : > { %v636_v43 = vsub.f32 %v2591_v39, %v2599_v40  ;;  %vm576_vm7 = vcmp.ge.f32.partialorder %v3495_v38, %v3451_v20  ;;  %vm613_vm8 = vcmp.ge.f32.partialorder %v3495_v38, %v3454_v21  ;;  %v664_v55 = vsub.f32 %v3495_v38, %v3462_v24 }
 0x141   : > { %v3506_v44 = vpop.f32.mrf.mxu1  ;;  %v682_v45 = vmul.f32 %v3457_v22, %v663_v41  ;;  %v2592_v46 = vsel %vm576_vm7, 1.0, %v3214_v0  ;;  %v2600_v47 = vsel %vm613_vm8, 1.0, %v3214_v0  ;;  %v3523_v53 = vmul.f32 %v681_v42, %v635_v37  ;;  %v790_v41 = vld [vmem:[#allocation5 + $0x7] ss:$8 sm:$0x3] }
 0x142   : > { %744 = vrot.lane.b32.xlu0 %v635_v37, %s3215_s22  ;;  %746 = vrot.lane.b32.xlu1 %v636_v43, %s3215_s22  ;;  %v637_v48 = vsub.f32 %v2592_v46, %v2600_v47  ;;  %vm577_vm9 = vcmp.ge.f32.partialorder %v3506_v44, %v3442_v17  ;;  %vm614_vm10 = vcmp.ge.f32.partialorder %v3506_v44, %v3445_v18 }
 0x143   : > { %v3517_v49 = vmul.f32 %v682_v45, %v636_v43  ;;  %v3519_v50 = vpop.f32.mrf.mxu1  ;;  %v2593_v51 = vsel %vm577_vm9, 1.0, %v3214_v0  ;;  %v2601_v52 = vsel %vm614_vm10, 1.0, %v3214_v0  ;;  %v683_v62 = vmul.f32 %v3475_v29, %v664_v55 }
 0x144   : > { %v638_v54 = vsub.f32 %v2593_v51, %v2601_v52  ;;  %vm578_vm11 = vcmp.ge.f32.partialorder %v3519_v50, %v3451_v20  ;;  %vm615_vm12 = vcmp.ge.f32.partialorder %v3519_v50, %v3454_v21  ;;  %v666_v9 = vsub.f32 %v3519_v50, %v3462_v24 }
 0x145   : > { %v3531_v56 = vpop.f32.mrf.mxu1  ;;  %v2594_v57 = vsel %vm578_vm11, 1.0, %v3214_v0  ;;  %v2602_v58 = vsel %vm615_vm12, 1.0, %v3214_v0  ;;  %v3552_v4 = vmul.f32 %v683_v62, %v637_v48  ;;  %v665_v14 = vsub.f32 %v3506_v44, %v3448_v19 }
 0x146   : > { %748 = vrot.lane.b32.xlu1 %v637_v48, %s3215_s22  ;;  %750 = vrot.lane.b32.xlu0 %v638_v54, %s3215_s22  ;;  %vm579_vm13 = vcmp.ge.f32.partialorder %v3531_v56, %v3442_v17  ;;  %vm616_vm14 = vcmp.ge.f32.partialorder %v3531_v56, %v3445_v18  ;;  %v639_v63 = vsub.f32 %v2594_v57, %v2602_v58 }
 0x147   : > { %v3541_v59 = vpop.f32.mrf.mxu1  ;;  %v2595_v60 = vsel %vm579_vm13, 1.0, %v3214_v0  ;;  %v2603_v61 = vsel %vm616_vm14, 1.0, %v3214_v0  ;;  %v685_v11 = vmul.f32 %v3475_v29, %v666_v9  ;;  %v667_v16 = vsub.f32 %v3531_v56, %v3448_v19  ;;  %v649_v19 = vld [vmem:[#allocation5 + $0x5] ss:$8 sm:$0x3] }
 0x148   : > { %v640_v1 = vsub.f32 %v2595_v60, %v2603_v61  ;;  %vm580_vm15 = vcmp.ge.f32.partialorder %v3541_v59, %v3451_v20  ;;  %vm617_vm1 = vcmp.ge.f32.partialorder %v3541_v59, %v3454_v21  ;;  %v684_v18 = vmul.f32 %v3457_v22, %v665_v14 }
 0x149   : > { %v2596_v2 = vsel %vm580_vm15, 1.0, %v3214_v0  ;;  %v2604_v3 = vsel %vm617_vm1, 1.0, %v3214_v0  ;;  %v3565_v17 = vmul.f32 %v685_v11, %v639_v63  ;;  %v686_v20 = vmul.f32 %v3457_v22, %v667_v16 }
 0x14a   : > { %752 = vrot.lane.b32.xlu1 %v639_v63, %s3215_s22  ;;  %754 = vrot.lane.b32.xlu0 %v640_v1, %s3215_s22  ;;  %v3559_v13 = vsub.f32 %v2596_v2, %v2604_v3  ;;  %v3571_v21 = vmul.f32 %v684_v18, %v638_v54  ;;  %v3579_v30 = vrot.slane %v647_v27, %v3436_v12 }
 0x14b   : > { %v3573_v25 = vmul.f32 %v686_v20, %v640_v1  ;;  %v708_v33 = vsub.f32 %v3576_v28, %v3470_v26  ;;  %v3584_v34 = vrot.slane %v649_v19, %v3439_v15  ;;  %v3587_v22 = vrot.slane %v788_v31, %v3439_v15 }
 0x14c   : > { %v707_v37 = vsub.f32 %v3579_v30, %v3459_v23  ;;  %v719_v39 = vrot.slane %v649_v19, %v3436_v12  ;;  %v3593_v40 = vrot.slane %v788_v31, %v3436_v12  ;;  %v709_v42 = vsub.f32 %v3579_v30, %v3482_v32 }
 0x14d   : > { %v710_v43 = vsub.f32 %v3576_v28, %v3495_v38  ;;  %v727_v45 = vmul.f32 %v3584_v34, %v708_v33  ;;  %v807_v46 = vsub.f32 %v3470_v26, %v3587_v22  ;;  %v3603_v47 = vrot.slane %v790_v41, %v3439_v15 }
 0x14e   : > { %756 = vrot.lane.b32.xlu1 %v3559_v13, %s3215_s22  ;;  %v726_v48 = vmul.f32 %v719_v39, %v707_v37  ;;  %v806_v54 = vsub.f32 %v3459_v23, %v3593_v40  ;;  %v3608_v55 = vrot.slane %v790_v41, %v3436_v12  ;;  %v728_v61 = vmul.f32 %v719_v39, %v709_v42 }
 0x14f   : > { %v729_v62 = vmul.f32 %v3584_v34, %v710_v43  ;;  %v711_v63 = vsub.f32 %v3579_v30, %v3506_v44  ;;  %v712_v2 = vsub.f32 %v3576_v28, %v3519_v50  ;;  %v826_v3 = vmul.f32 %v3603_v47, %v807_v46 }
 0x150   : > { %v809_v9 = vsub.f32 %v3495_v38, %v3587_v22  ;;  %v668_v16 = vsub.f32 %v3541_v59, %v3462_v24  ;;  %v825_v18 = vmul.f32 %v3608_v55, %v806_v54  ;;  %v808_v20 = vsub.f32 %v3482_v32, %v3593_v40 }
 0x151   : > { %v713_v19 = vsub.f32 %v3579_v30, %v3531_v56  ;;  %v730_v24 = vmul.f32 %v719_v39, %v711_v63  ;;  %v731_v42 = vmul.f32 %v3584_v34, %v712_v2  ;;  %v811_v30 = vsub.f32 %v3519_v50, %v3587_v22 }
 0x152   : > { %v828_v43 = vmul.f32 %v3603_v47, %v809_v9 }
 0x153   : > { %v830_v63 = vmul.f32 %v3603_v47, %v811_v30 }
 0x1b0   : > { %v743_v35 = vpop.permute.xlu0 %742 }
 0x1b4   : > { %v745_v51 = vpop.permute.xlu0 %744  ;;  %v747_v52 = vpop.permute.xlu1 %746 }
 0x1b5   : > { %v759_v57 = vsel %vm758_vm2, %v743_v35, %v745_v51  ;;  %v772_v58 = vmul.f32 %v745_v51, %v727_v45  ;;  %v714_v35 = vsub.f32 %v3576_v28, %v3541_v59  ;;  %v827_v51 = vmul.f32 %v3608_v55, %v808_v20 }
 0x1b6   : > { %v771_v60 = vmul.f32 %v759_v57, %v726_v48  ;;  %v687_v48 = vmul.f32 %v3475_v29, %v668_v16  ;;  %v810_v28 = vsub.f32 %v3506_v44, %v3593_v40  ;;  %v2910_v29 = vld [vmem:[%s4470_s4 + $0x38] sm:$0xff]  }
 0x1b7   : > { %v780_v1 = vadd.f32 %v772_v58, %v3523_v53  ;;  %2739 = vmatprep.subr.bf16.mxu1 %v2910_v29 }
 0x1b8   : > { %v749_v11 = vpop.permute.xlu1 %748  ;;  %v779_v14 = vadd.f32 %v771_v60, %v3489_v36  ;;  %v751_v36 = vpop.permute.xlu0 %750  ;;  %2740 = vmatpush3.bf16.msra.mxu1 %v2910_v29 }
 0x1b9   : > { %v760_v53 = vsel %vm758_vm2, %v747_v52, %v749_v11  ;;  %v774_v27 = vmul.f32 %v749_v11, %v729_v62  ;;  %889 = vrot.lane.b32.xlu1 %v780_v1, %s3215_s22  ;;  %v3630_v31 = vmul.f32 %v826_v3, %v780_v1  ;;  %v733_v62 = vmul.f32 %v3584_v34, %v714_v35 }
 0x1ba   : > { %v773_v33 = vmul.f32 %v760_v53, %v728_v61  ;;  %887 = vrot.lane.b32.xlu0 %v779_v14, %s3215_s22  ;;  %v3635_v37 = vmul.f32 %v825_v18, %v779_v14  ;;  %v732_v61 = vmul.f32 %v719_v39, %v713_v19  ;;  %v695_v3 = vmul.f32 %v687_v48, %v3559_v13 }
 0x1bb   : > { %v782_v41 = vadd.f32 %v774_v27, %v3552_v4  ;;  %v829_v11 = vmul.f32 %v3608_v55, %v810_v28  ;;  %v812_v14 = vsub.f32 %v3531_v56, %v3593_v40  ;;  %v2582_v27 = vmul.f32 -1.442695, %v3416_v6  ;;  %v794_v28 = vld [vmem:[#allocation5 + $0x11] ss:$8 sm:$0x3] }
 0x1bc   : > { %v753_v45 = vpop.permute.xlu1 %752  ;;  %v781_v46 = vadd.f32 %v773_v33, %v3517_v49  ;;  %v2911_v49 = vld [vmem:[%s4470_s4 + $0x30] sm:$0xff]   ;;  %v755_v1 = vpop.permute.xlu0 %754  ;;  %v2581_v19 = vmul.f32 -1.442695, %v3414_v5  ;;  %v2583_v33 = vmul.f32 -1.442695, %v3421_v7  ;;  %v3708_v29 = vrot.slane %v794_v28, %v3436_v12 }
 0x1bd   : > { %v761_v52 = vsel %vm758_vm2, %v751_v36, %v753_v45  ;;  %v776_v4 = vmul.f32 %v753_v45, %v731_v42  ;;  %893 = vrot.lane.b32.xlu1 %v782_v41, %s3215_s22  ;;  %v3649_v54 = vmul.f32 %v828_v43, %v782_v41  ;;  %2741 = vmatprep.subr.bf16.mxu1 %v2911_v49  ;;  %2934 = vpow2.f32 %v2582_v27  ;;  %v792_v41 = vld [vmem:[#allocation5 + $0x10] ss:$8 sm:$0x3]  ;;  %v2913_v45 = vld [vmem:[%s4470_s4 + $0x20] sm:$0xff]  }
 0x1be   : > { %v775_v57 = vmul.f32 %v761_v52, %v730_v24  ;;  %891 = vrot.lane.b32.xlu0 %v781_v46, %s3215_s22  ;;  %v3652_v58 = vmul.f32 %v827_v51, %v781_v46  ;;  %v831_v20 = vmul.f32 %v3608_v55, %v812_v14  ;;  %2742 = vmatpush3.bf16.msra.mxu1 %v2911_v49  ;;  %2936 = vpow2.f32 %v2581_v19  ;;  %v2914_v49 = vld [vmem:[%s4470_s4 + $0x18] sm:$0xff]  }
 0x1bf   : > { %v784_v60 = vadd.f32 %v776_v4, %v3565_v17  ;;  %2938 = vpow2.f32 %v2583_v33  ;;  %v3692_v30 = vrot.slane %v792_v41, %v3439_v15  ;;  %v3698_v48 = vrot.slane %v792_v41, %v3436_v12 }
 0x1c0   : > { %v757_v2 = vpop.permute.xlu1 %756  ;;  %v783_v9 = vadd.f32 %v775_v57, %v3571_v21  ;;  %v2912_v21 = vld [vmem:[%s4470_s4 + $0x28] sm:$0xff]   ;;  %v3703_v4 = vrot.slane %v794_v28, %v3439_v15  ;;  %v813_v41 = vsub.f32 %v3541_v59, %v3587_v22 }
 0x1c1   : > { %v762_v16 = vsel %vm758_vm2, %v755_v1, %v757_v2  ;;  %v778_v17 = vmul.f32 %v757_v2, %v733_v62  ;;  %897 = vrot.lane.b32.xlu1 %v784_v60, %s3215_s22  ;;  %v3670_v34 = vmul.f32 %v830_v63, %v784_v60  ;;  %2743 = vmatprep.subr.bf16.mxu1 %v2912_v21  ;;  %v3713_v60 = vld [vmem:[#allocation5 + $0x12] ss:$0 sm:$0xff] }
 0x1c2   : > { %v777_v39 = vmul.f32 %v762_v16, %v732_v61  ;;  %895 = vrot.lane.b32.xlu0 %v783_v9, %s3215_s22  ;;  %v3673_v13 = vmul.f32 %v829_v11, %v783_v9  ;;  %2744 = vmatpush3.bf16.msra.mxu1 %v2912_v21  ;;  %v853_v52 = vsub.f32 %v3692_v30, %v3470_v26  ;;  %v2915_v11 = vld [vmem:[%s4470_s4 + $0x10] sm:$0xff]  }
 0x1c3   : > { %v3678_v40 = vadd.f32 %v778_v17, %v695_v3  ;;  %2745 = vmatprep.subr.bf16.mxu1 %v2913_v45  ;;  %v852_v57 = vsub.f32 %v3698_v48, %v3459_v23  ;;  %v855_v26 = vsub.f32 %v3692_v30, %v3495_v38  ;;  %v854_v63 = vsub.f32 %v3698_v48, %v3482_v32  ;;  %v3727_v38 = vld [vmem:[#allocation5 + $0x13] ss:$0 sm:$0xff] }
 0x1c4   : > { %v785_v18 = vadd.f32 %v777_v39, %v3573_v25  ;;  %v2584_v25 = vmul.f32 -1.442695, %v3426_v8  ;;  %v872_v61 = vmul.f32 %v3703_v4, %v853_v52  ;;  %v935_v9 = vsub.f32 %v3459_v23, %v3713_v60 }
 0x1c5   : > { %901 = vrot.lane.b32.xlu1 %v3678_v40, %s3215_s22  ;;  %v871_v2 = vmul.f32 %v3708_v29, %v852_v57  ;;  %v857_v16 = vsub.f32 %v3692_v30, %v3519_v50  ;;  %v874_v21 = vmul.f32 %v3703_v4, %v855_v26  ;;  %v856_v27 = vsub.f32 %v3698_v48, %v3506_v44 }
 0x1c6   : > { %899 = vrot.lane.b32.xlu0 %v785_v18, %s3215_s22  ;;  %v3685_v53 = vmul.f32 %v831_v20, %v785_v18  ;;  %2940 = vpow2.f32 %v2584_v25  ;;  %2746 = vmatpush3.bf16.msra.mxu1 %v2913_v45  ;;  %v873_v20 = vmul.f32 %v3708_v29, %v854_v63  ;;  %v939_v50 = vmul.f32 %v935_v9, %v3727_v38 }
 0x1c7   : > { %2747 = vmatprep.subr.bf16.mxu1 %v2914_v49  ;;  %v875_v57 = vmul.f32 %v3708_v29, %v856_v27  ;;  %v858_v22 = vsub.f32 %v3698_v48, %v3531_v56  ;;  %v832_v48 = vmul.f32 %v3603_v47, %v813_v41  ;;  %v1247_v27 = vld [vmem:[#allocation7 + $0x50] sm:$0xff] }
 0x1c9   : > { %v877_v47 = vmul.f32 %v3708_v29, %v858_v22 }
 0x1ca   : > { %v2935_v55 = vpop.eup %2934  ;;  %2748 = vmatpush3.bf16.msra.mxu1 %v2914_v49 }
 0x1cb   : > { %v2937_v36 = vpop.eup %2936  ;;  %v440_v35 = vadd.f32 1.0, %v2935_v55  ;;  %2749 = vmatprep.subr.bf16.mxu1 %v2915_v11  ;;  %v996_v55 = vld [vmem:[%s4469_s3 + $0x8] sm:$0xff] }
 0x1cc   : > { %v2939_v24 = vpop.eup %2938  ;;  %v439_v43 = vadd.f32 1.0, %v2937_v36  ;;  %v2916_v36 = vld [vmem:[%s4470_s4 + $0x8] sm:$0xff]   ;;  %2759 = vmatprep.subr.mxu0 %v996_v55 }
 0x1cd   : > { %v441_v46 = vadd.f32 1.0, %v2939_v24  ;;  %2942 = vrcp.f32 %v440_v35  ;;  %v995_v24 = vld [vmem:[%s4469_s3] sm:$0xff]  ;;  %2760 = vmatpush3.msra.mxu0 %v996_v55 }
 0x1ce   : > { %2944 = vrcp.f32 %v439_v43  ;;  %2750 = vmatpush3.bf16.msra.mxu1 %v2915_v11  ;;  %2761 = vmatprep.subr.mxu0 %v995_v24 }
 0x1cf   : > { %2946 = vrcp.f32 %v441_v46  ;;  %2751 = vmatprep.subr.bf16.mxu1 %v2916_v36  ;;  %2762 = vmatpush3.msra.mxu0 %v995_v24 }
 0x1d0   : > { %1286 = vmatprep.subr.mxu0 %v1247_v27 }
 0x1d2   : > { %2752 = vmatpush3.bf16.msra.mxu1 %v2916_v36 }
 0x1d3   : > { %v2941_v42 = vpop.eup %2940 }
 0x1d4   : > { %v442_v51 = vadd.f32 1.0, %v2941_v42  ;;  %v859_v42 = vsub.f32 %v3692_v30, %v3541_v59  ;;  %v937_v59 = vsub.f32 %v3506_v44, %v3713_v60 }
 0x1d6   : > { %2948 = vrcp.f32 %v442_v51 }
 0x1da   : > { %v2943_v43 = vpop.eup %2942 }
 0x1db   : > { %v2945_v28 = vpop.eup %2944 }
 0x1dc   : > { %v2947_v30 = vpop.eup %2946 }
 0x22b   : > { %v890_v62 = vpop.permute.xlu1 %889 }
 0x22c   : > { %v916_v1 = vmul.f32 %v890_v62, %v872_v61  ;;  %v888_v3 = vpop.permute.xlu0 %887 }
 0x22d   : > { %v903_v14 = vsel %vm758_vm2, %v888_v3, %v890_v62  ;;  %v452_v62 = vmul.f32 %v2943_v43, %v3416_v6  ;;  %v2917_v6 = vld [vmem:[%s4470_s4] sm:$0xff]  }
 0x22e   : > { %v924_v17 = vadd.f32 %v916_v1, %v3630_v31  ;;  %v915_v39 = vmul.f32 %v903_v14, %v871_v2  ;;  %v936_v31 = vsub.f32 %v3482_v32, %v3713_v60  ;;  %v878_v1 = vmul.f32 %v3703_v4, %v859_v42  ;;  %v2949_v2 = vpop.eup %2948  ;;  %2753 = vmatprep.subr.bf16.mxu1 %v2917_v6 }
 0x22f   : > { %v894_v18 = vpop.permute.xlu1 %893  ;;  %v453_v14 = vmul.f32 %v2947_v30, %v3421_v7  ;;  %v454_v7 = vmul.f32 %v2949_v2, %v3426_v8  ;;  %2754 = vmatpush3.bf16.msra.mxu1 %v2917_v6  ;;  %v1248_v2 = vld [vmem:[#allocation7 + $0x58] sm:$0xff]  ;;  %v1242_v6 = vld [vmem:[#allocation7 + $0x28] sm:$0xff] }
 0x230   : > { %v918_v19 = vmul.f32 %v894_v18, %v874_v21  ;;  %v892_v33 = vpop.permute.xlu0 %891  ;;  %965 = vrot.lane.b32.xlu1 %v924_v17, %s3215_s22  ;;  %v923_v25 = vadd.f32 %v915_v39, %v3635_v37  ;;  %v876_v37 = vmul.f32 %v3703_v4, %v857_v16  ;;  %v940_v26 = vmul.f32 %v936_v31, %v3727_v38  ;;  %v934_v31 = vld [vmem:[#allocation5 + $0x15] ss:$0 sm:$0xff] }
 0x231   : > { %v904_v35 = vsel %vm758_vm2, %v892_v33, %v894_v18  ;;  %v941_v4 = vmul.f32 %v937_v59, %v3727_v38  ;;  %v840_v17 = vmul.f32 %v832_v48, %v3678_v40  ;;  %v1244_v33 = vld [vmem:[#allocation7 + $0x38] sm:$0xff]  ;;  %2769 = vmatprep.subr.mxu1 %v1248_v2 }
 0x232   : > { %v926_v45 = vadd.f32 %v918_v19, %v3649_v54  ;;  %v917_v46 = vmul.f32 %v904_v35, %v873_v20  ;;  %963 = vrot.lane.b32.xlu0 %v923_v25, %s3215_s22  ;;  %v3758_v51 = vmul.f32 %v939_v50, %v923_v25  ;;  %v1246_v19 = vld [vmem:[#allocation7 + $0x48] sm:$0xff]  ;;  %v933_v25 = vld [vmem:[#allocation5 + $0x14] ss:$0 sm:$0xff] }
 0x233   : > { %v898_v52 = vpop.permute.xlu1 %897  ;;  %v947_v50 = vsub.f32 %v933_v25, %v3459_v23  ;;  %v948_v36 = vsub.f32 %v933_v25, %v3482_v32  ;;  %v950_v59 = vsub.f32 %v933_v25, %v3531_v56 }
 0x234   : > { %v920_v54 = vmul.f32 %v898_v52, %v876_v37  ;;  %v896_v49 = vpop.permute.xlu0 %895  ;;  %969 = vrot.lane.b32.xlu1 %v926_v45, %s3215_s22  ;;  %v925_v61 = vadd.f32 %v917_v46, %v3652_v58  ;;  %v451_v58 = vmul.f32 %v2945_v28, %v3414_v5  ;;  %v949_v45 = vsub.f32 %v933_v25, %v3506_v44  ;;  %v2140_v25 = vld [vmem:[#allocation10] sm:$0xff] }
 0x235   : > { %v905_v63 = vsel %vm758_vm2, %v896_v49, %v898_v52  ;;  %v951_v55 = vmul.f32 %v947_v50, %v934_v31  ;;  %v952_v42 = vmul.f32 %v948_v36, %v934_v31 }
 0x236   : > { %v928_v3 = vadd.f32 %v920_v54, %v3670_v34  ;;  %v919_v9 = vmul.f32 %v905_v63, %v875_v57  ;;  %967 = vrot.lane.b32.xlu0 %v925_v61, %s3215_s22  ;;  %v944_v11 = vmul.f32 %v940_v26, %v925_v61  ;;  %v938_v34 = vsub.f32 %v3531_v56, %v3713_v60  ;;  %v1240_v56 = vld [vmem:[#allocation7 + $0x18] sm:$0xff] }
 0x237   : > { %v902_v16 = vpop.permute.xlu1 %901  ;;  %2763 = vmatprep.mubr.msk.f32.mxu0 %vm459_vm0, %v451_v58  ;;  %v953_v57 = vmul.f32 %v949_v45, %v934_v31  ;;  %v1237_v58 = vld [vmem:[#allocation7] sm:$0xff] }
 0x238   : > { %v922_v39 = vmul.f32 %v902_v16, %v878_v1  ;;  %v900_v21 = vpop.permute.xlu0 %899  ;;  %973 = vrot.lane.b32.xlu1 %v928_v3, %s3215_s22  ;;  %v927_v5 = vadd.f32 %v919_v9, %v3673_v13  ;;  %2764 = vmatmul.mubr.msk.f32.vlgmr.msra.gmra.mxu0 %vm459_vm0, %v452_v62  ;;  %v942_v60 = vmul.f32 %v938_v34, %v3727_v38  ;;  %v1243_v1 = vld [vmem:[#allocation7 + $0x30] sm:$0xff]  ;;  %v1241_v3 = vld [vmem:[#allocation7 + $0x20] sm:$0xff] }
 0x239   : > { %v906_v18 = vsel %vm758_vm2, %v900_v21, %v902_v16  ;;  %2766 = vmatprep.mubr.msk.f32.mxu0 %vm459_vm0, %v453_v14  ;;  %1287 = vmatpush1.msra.mxu0 %v1246_v19  ;;  %v1245_v9 = vld [vmem:[#allocation7 + $0x40] sm:$0xff]  ;;  %v1239_v14 = vld [vmem:[#allocation7 + $0x10] sm:$0xff]  ;;  %v2143_v16 = vld [vmem:[#allocation10 + $0x18] sm:$0xff] }
 0x23a   : > { %v930_v29 = vadd.f32 %v922_v39, %v840_v17  ;;  %v921_v20 = vmul.f32 %v906_v18, %v877_v47  ;;  %971 = vrot.lane.b32.xlu0 %v927_v5, %s3215_s22  ;;  %v945_v40 = vmul.f32 %v941_v4, %v927_v5  ;;  %1288 = vmatprep.subr.mxu0 %v1244_v33  ;;  %v2142_v19 = vld [vmem:[#allocation10 + $0x10] sm:$0xff]  ;;  %v2141_v33 = vld [vmem:[#allocation10 + $0x8] sm:$0xff] }
 0x23b   : > { %1289 = vmatpush1.msra.mxu0 %v1243_v1 }
 0x23c   : > { %977 = vrot.lane.b32.xlu1 %v930_v29, %s3215_s22  ;;  %v929_v13 = vadd.f32 %v921_v20, %v3685_v53  ;;  %2767 = vmatmul.mubr.msk.f32.gmra.mxu0 %vm459_vm0, %v454_v7  ;;  %vm1249_vm0 = vcmask 261120  }
 0x23d   : > { %1326 = vmatprep.mubr.f32.mxu0 %v3214_v0  ;;  %1290 = vmatprep.subr.mxu0 %v1241_v3 }
 0x23e   : > { %975 = vrot.lane.b32.xlu0 %v929_v13, %s3215_s22  ;;  %v946_v8 = vmul.f32 %v942_v60, %v929_v13  ;;  %1291 = vmatpush1.msra.mxu0 %v1240_v56  ;;  %s3216_s22 = smov 96  }
 0x2a2   : > { %v966_v53 = vpop.permute.xlu1 %965 }
 0x2a4   : > { %v964_v38 = vpop.permute.xlu0 %963 }
 0x2a5   : > { %v979_v24 = vsel %vm758_vm2, %v964_v38, %v966_v53 }
 0x2a6   : > { %v987_v35 = vmul.f32 %v979_v24, %v951_v55  ;;  %v970_v37 = vpop.permute.xlu1 %969 }
 0x2a8   : > { %v991_v41 = vadd.f32 %v987_v35, %v3758_v51  ;;  %v968_v43 = vpop.permute.xlu0 %967  ;;  %v954_v51 = vmul.f32 %v950_v59, %v934_v31 }
 0x2a9   : > { %v980_v46 = vsel %vm758_vm2, %v968_v43, %v970_v37 }
 0x2aa   : > { %v988_v28 = vmul.f32 %v980_v46, %v952_v42  ;;  %v974_v23 = vpop.permute.xlu1 %973 }
 0x2ac   : > { %v992_v52 = vadd.f32 %v988_v28, %v944_v11  ;;  %v972_v22 = vpop.permute.xlu0 %971  ;;  %v1238_v11 = vld [vmem:[#allocation7 + $0x8] sm:$0xff] }
 0x2ad   : > { %v981_v32 = vsel %vm758_vm2, %v972_v22, %v974_v23  ;;  %1292 = vmatprep.subr.mxu0 %v1238_v11 }
 0x2ae   : > { %v989_v30 = vmul.f32 %v981_v32, %v953_v57  ;;  %v997_v54 = vpack.c.bf16 %v992_v52, %v991_v41  ;;  %v978_v61 = vpop.permute.xlu1 %977  ;;  %1293 = vmatpush1.msra.mxu0 %v1237_v58  ;;  %v1436_v52 = vld [vmem:[#allocation8] ss:$8 sm:$0x7]  ;;  %v1490_v57 = vld [vmem:[#allocation8 + $0x1] ss:$8 sm:$0x7] }
 0x2af   : > { %v3823_v22 = vrot.slane %v1436_v52, %v3436_v12  ;;  %v3826_v59 = vrot.slane %v1490_v57, %v3436_v12  ;;  %v3829_v32 = vsub.s32 2, %v3433_v10 }
 0x2b0   : > { %v993_v49 = vadd.f32 %v989_v30, %v945_v40  ;;  %v976_v26 = vpop.permute.xlu0 %975  ;;  %2755 = vmatprep.mubr.bf16.mxu1 %v997_v54  ;;  %v3832_v30 = vrot.slane %v1436_v52, %v3439_v15  ;;  %v3835_v54 = vrot.slane %v1490_v57, %v3439_v15 }
 0x2b1   : > { %v982_v44 = vsel %vm758_vm2, %v976_v26, %v978_v61  ;;  %v3844_v61 = vrot.slane %v1436_v52, %v3829_v32  ;;  %v3847_v10 = vrot.slane %v1490_v57, %v3829_v32  ;;  %v3849_v26 = vld [vmem:[#allocation8 + $0x3] ss:$8 sm:$0x7] }
 0x2b2   : > { %v990_v62 = vmul.f32 %v982_v44, %v954_v51  ;;  %v1556_v51 = vld [vmem:[#allocation8 + $0x2] ss:$8 sm:$0x7]  ;;  %v3872_v11 = vrot.slane %v3849_v26, %v3436_v12 }
 0x2b4   : > { %v994_v63 = vadd.f32 %v990_v62, %v946_v8 }
 0x2b6   : > { %v998_v48 = vpack.c.bf16 %v994_v63, %v993_v49 }
 0x2b8   : > { %2756 = vmatmul.mubr.bf16.vlgmr.msra.gmra.mxu1 %v998_v48 }
 0x2b9   : > { %2770 = vmatpush3.msra.mxu1 %v1248_v2 }
 0x2ba   : > { %2771 = vmatprep.subr.mxu1 %v1245_v9 }
 0x2bb   : > { %2772 = vmatpush3.msra.mxu1 %v1245_v9  ;;  %v3868_v9 = vrot.slane %v1556_v51, %v3436_v12 }
 0x2bc   : > { %2773 = vmatprep.subr.mxu1 %v1242_v6 }
 0x2bd   : > { %2774 = vmatpush3.msra.mxu1 %v1242_v6 }
 0x2be   : > { %2775 = vmatprep.subr.mxu1 %v1239_v14 }
 0x2bf   : > { %2776 = vmatpush3.msra.mxu1 %v1239_v14 }
 0x2c0   : > { %2783 = vmatprep.subr.mxu1 %v2143_v16 }
 0x2f8   : > { %v2765_v47 = vpop.f32.mrf.mxu0 }
 0x2fa   : > { %v1190_v4 = vpop.f32.mrf.mxu0 }
 0x2fc   : > { %v2768_v34 = vpop.f32.mrf.mxu0 }
 0x2fe   : > { %v1200_v17 = vpop.f32.mrf.mxu0 }
 0x378   : > { %v2757_v39 = vpop.f32.mrf.mxu1 }
 0x379   : > { %v1201_v21 = vadd.f32 %v2757_v39, %v1200_v17 }
 0x37a   : > { %v1097_v5 = vpop.f32.mrf.mxu1 }
 0x37b   : > { %v2619_v7 = vmul.f32 -1.442695, %v1201_v21  ;;  %v1191_v18 = vadd.f32 %v1190_v4, %v1097_v5 }
 0x37c   : > { %v2758_v29 = vpop.f32.mrf.mxu1 }
 0x37d   : > { %v2617_v20 = vmul.f32 -1.442695, %v1191_v18  ;;  %v1206_v40 = vadd.f32 %v2768_v34, %v2758_v29  ;;  %2621 = vmatmul.mubr.msk.f32.vlgmr.msra.gmra.mxu0 %vm1249_vm0, %v1191_v18  ;;  %2777 = vmatprep.mubr.msk.f32.mxu1 %vm1249_vm0, %v1191_v18  ;;  %2950 = vpow2.f32 %v2619_v7  ;;  %v3918_v29 = vrot.slane %v1556_v51, %v3829_v32 }
 0x37e   : > { %v1100_v13 = vpop.f32.mrf.mxu1  ;;  %1332 = vmatprep.mubr.f32.mxu0 %v3214_v0 }
 0x37f   : > { %2952 = vpow2.f32 %v2617_v20  ;;  %v2620_v60 = vmul.f32 -1.442695, %v1206_v40  ;;  %v1196_v8 = vadd.f32 %v2765_v47, %v1100_v13 }
 0x381   : > { %2954 = vpow2.f32 %v2620_v60  ;;  %v2618_v27 = vmul.f32 -1.442695, %v1196_v8  ;;  %2622 = vmatmul.mubr.msk.f32.gmra.mxu0 %vm1249_vm0, %v1196_v8  ;;  %2778 = vmatmul.mubr.msk.f32.vlgmr.msra.gmra.mxu1 %vm1249_vm0, %v1196_v8 }
 0x382   : > { %2780 = vmatprep.mubr.msk.f32.mxu1 %vm1249_vm0, %v1201_v21  ;;  %1338 = vmatprep.mubr.f32.mxu0 %v3214_v0 }
 0x383   : > { %2956 = vpow2.f32 %v2618_v27  ;;  %2784 = vmatpush3.msra.mxu1 %v2143_v16 }
 0x384   : > { %2785 = vmatprep.subr.mxu1 %v2142_v19 }
 0x385   : > { %2623 = vmatmul.mubr.msk.f32.gmra.mxu0 %vm1249_vm0, %v1201_v21  ;;  %2781 = vmatmul.mubr.msk.f32.gmra.mxu1 %vm1249_vm0, %v1206_v40 }
 0x386   : > { %1344 = vmatprep.mubr.f32.mxu0 %v3214_v0  ;;  %2786 = vmatpush3.msra.mxu1 %v2142_v19 }
 0x387   : > { %2787 = vmatprep.subr.mxu1 %v2141_v33 }
 0x388   : > { %2788 = vmatpush3.msra.mxu1 %v2141_v33  ;;  %v3940_v33 = vld [vmem:[#allocation8 + $0x4] ss:$8 sm:$0x7] }
 0x389   : > { %2624 = vmatmul.mubr.msk.f32.gmra.mxu0 %vm1249_vm0, %v1206_v40  ;;  %2789 = vmatprep.subr.mxu1 %v2140_v25 }
 0x38a   : > { %2790 = vmatpush3.msra.mxu1 %v2140_v25  ;;  %v2951_v50 = vpop.eup %2950 }
 0x38b   : > { %v1223_v38 = vadd.f32 1.0, %v2951_v50 }
 0x38c   : > { %v2953_v31 = vpop.eup %2952 }
 0x38d   : > { %v1221_v53 = vadd.f32 1.0, %v2953_v31 }
 0x38e   : > { %v2955_v55 = vpop.eup %2954 }
 0x38f   : > { %2958 = vrcp.f32 %v1221_v53  ;;  %v1224_v24 = vadd.f32 1.0, %v2955_v55  ;;  %v3946_v53 = vld [vmem:[#allocation8 + $0x5] ss:$8 sm:$0x7]  ;;  %v1603_v55 = vrot.slane %v3849_v26, %v3829_v32 }
 0x390   : > { %v2957_v36 = vpop.eup %2956  ;;  %2960 = vrcp.f32 %v1223_v38  ;;  %v1643_v38 = vrot.slane %v3940_v33, %v3829_v32 }
 0x391   : > { %v1222_v35 = vadd.f32 1.0, %v2957_v36 }
 0x393   : > { %2962 = vrcp.f32 %v1222_v35  ;;  %v1671_v35 = vrot.slane %v3946_v53, %v3829_v32 }
 0x394   : > { %2964 = vrcp.f32 %v1224_v24 }
 0x39c   : > { %v2959_v37 = vpop.eup %2958 }
 0x39d   : > { %v1233_v41 = vmul.f32 %v2959_v37, %v1191_v18  ;;  %v2961_v42 = vpop.eup %2960  ;;  %v3909_v18 = vrot.slane %v1556_v51, %v3439_v15 }
 0x39e   : > { %v1235_v28 = vmul.f32 %v2961_v42, %v1201_v21 }
 0x39f   : > { %2791 = vmatprep.mubr.msk.f32.mxu1 %vm1249_vm0, %v1233_v41 }
 0x3a0   : > { %v2963_v43 = vpop.eup %2962 }
 0x3a1   : > { %v1234_v45 = vmul.f32 %v2963_v43, %v1196_v8  ;;  %v2965_v46 = vpop.eup %2964 }
 0x3a2   : > { %v1236_v23 = vmul.f32 %v2965_v46, %v1206_v40 }
 0x3a3   : > { %2792 = vmatmul.mubr.msk.f32.vlgmr.msra.gmra.mxu1 %vm1249_vm0, %v1234_v45 }
 0x3a4   : > { %2794 = vmatprep.mubr.msk.f32.mxu1 %vm1249_vm0, %v1235_v28 }
 0x3a7   : > { %2795 = vmatmul.mubr.msk.f32.gmra.mxu1 %vm1249_vm0, %v1236_v23  ;;  %v3987_v23 = vrot.slane %v3849_v26, %v3439_v15 }
 0x43d   : > { %v3837_v49 = vpop.f32.mrf.mxu0 }
 0x43e   : > { %vm1453_vm3 = vcmp.ge.f32.partialorder %v3837_v49, %v3823_v22  ;;  %vm1507_vm4 = vcmp.ge.f32.partialorder %v3837_v49, %v3826_v59  ;;  %v1579_v20 = vsub.f32 %v3837_v49, %v3868_v9 }
 0x43f   : > { %v3851_v44 = vpop.f32.mrf.mxu0  ;;  %v2629_v62 = vsel %vm1453_vm3, 1.0, %v3214_v0  ;;  %v2641_v63 = vsel %vm1507_vm4, 1.0, %v3214_v0 }
 0x440   : > { %v3855_v48 = vsub.f32 %v2629_v62, %v2641_v63  ;;  %vm1454_vm5 = vcmp.ge.f32.partialorder %v3851_v44, %v3832_v30  ;;  %vm1508_vm6 = vcmp.ge.f32.partialorder %v3851_v44, %v3835_v54  ;;  %v1607_v37 = vmul.f32 %v3872_v11, %v1579_v20 }
 0x441   : > { %v3861_v1 = vpop.f32.mrf.mxu0  ;;  %v3863_v2 = vpop.f32.mrf.mxu1  ;;  %v2630_v3 = vsel %vm1454_vm5, 1.0, %v3214_v0  ;;  %v2642_v56 = vsel %vm1508_vm6, 1.0, %v3214_v0 }
 0x442   : > { %1699 = vrot.lane.b32.xlu0 %v3855_v48, %s3216_s22  ;;  %vm1458_vm7 = vcmp.ge.f32.partialorder %v3863_v2, %v3844_v61  ;;  %vm1512_vm8 = vcmp.ge.f32.partialorder %v3863_v2, %v3847_v10  ;;  %v3880_v58 = vsub.f32 %v2630_v3, %v2642_v56  ;;  %vm1456_vm9 = vcmp.ge.f32.partialorder %v3861_v1, %v3823_v22 }
 0x443   : > { %v3884_v6 = vpop.f32.mrf.mxu0  ;;  %v3886_v14 = vpop.f32.mrf.mxu1  ;;  %v2634_v16 = vsel %vm1458_vm7, 1.0, %v3214_v0  ;;  %v2646_v47 = vsel %vm1512_vm8, 1.0, %v3214_v0  ;;  %v2632_v4 = vsel %vm1456_vm9, 1.0, %v3214_v0  ;;  %vm1510_vm10 = vcmp.ge.f32.partialorder %v3861_v1, %v3826_v59 }
 0x444   : > { %v3893_v34 = vsub.f32 %v2634_v16, %v2646_v47  ;;  %v2644_v17 = vsel %vm1510_vm10, 1.0, %v3214_v0  ;;  %vm1457_vm11 = vcmp.ge.f32.partialorder %v3884_v6, %v3832_v30  ;;  %vm1511_vm12 = vcmp.ge.f32.partialorder %v3884_v6, %v3835_v54 }
 0x445   : > { %v3900_v39 = vpop.f32.mrf.mxu0  ;;  %v3902_v21 = vpop.f32.mrf.mxu1  ;;  %v2633_v5 = vsel %vm1457_vm11, 1.0, %v3214_v0  ;;  %v2645_v7 = vsel %vm1511_vm12, 1.0, %v3214_v0  ;;  %vm1455_vm13 = vcmp.ge.f32.partialorder %v3886_v14, %v3844_v61  ;;  %vm1509_vm14 = vcmp.ge.f32.partialorder %v3886_v14, %v3847_v10 }
 0x446   : > { %1709 = vrot.lane.b32.xlu1 %v3893_v34, %s3216_s22  ;;  %1701 = vrot.lane.b32.xlu0 %v3880_v58, %s3216_s22  ;;  %v3924_v13 = vsub.f32 %v2632_v4, %v2644_v17  ;;  %v3926_v60 = vsub.f32 %v2633_v5, %v2645_v7  ;;  %vm1464_vm15 = vcmp.ge.f32.partialorder %v3902_v21, %v3844_v61  ;;  %v2631_v27 = vsel %vm1455_vm13, 1.0, %v3214_v0 }
 0x447   : > { %v3922_v40 = vpop.f32.mrf.mxu0  ;;  %vm1518_vm1 = vcmp.ge.f32.partialorder %v3902_v21, %v3847_v10  ;;  %v3932_v8 = vpop.f32.mrf.mxu1  ;;  %v2643_v19 = vsel %vm1509_vm14, 1.0, %v3214_v0  ;;  %v2640_v36 = vsel %vm1464_vm15, 1.0, %v3214_v0  ;;  %vm1459_vm5 = vcmp.ge.f32.partialorder %v3900_v39, %v3823_v22 }
 0x448   : > { %vm1460_vm2 = vcmp.ge.f32.partialorder %v3922_v40, %v3832_v30  ;;  %vm1514_vm0 = vcmp.ge.f32.partialorder %v3922_v40, %v3835_v54  ;;  %v2652_v24 = vsel %vm1518_vm1, 1.0, %v3214_v0  ;;  %v1545_v42 = vsub.f32 %v2631_v27, %v2643_v19 }
 0x449   : > { %v3942_v25 = vpop.f32.mrf.mxu0  ;;  %v2636_v50 = vsel %vm1460_vm2, 1.0, %v3214_v0  ;;  %v2648_v31 = vsel %vm1514_vm0, 1.0, %v3214_v0  ;;  %vm1461_vm3 = vcmp.ge.f32.partialorder %v3932_v8, %v3844_v61  ;;  %vm1515_vm4 = vcmp.ge.f32.partialorder %v3932_v8, %v3847_v10 }
 0x44a   : > { %1705 = vrot.lane.b32.xlu1 %v3924_v13, %s3216_s22  ;;  %1707 = vrot.lane.b32.xlu0 %v3926_v60, %s3216_s22  ;;  %v3975_v43 = vsub.f32 %v2636_v50, %v2648_v31  ;;  %vm1513_vm8 = vcmp.ge.f32.partialorder %v3900_v39, %v3826_v59  ;;  %v1554_v45 = vsub.f32 %v2640_v36, %v2652_v24  ;;  %v2637_v52 = vsel %vm1461_vm3, 1.0, %v3214_v0 }
 0x44b   : > { %v3967_v41 = vpop.f32.mrf.mxu0  ;;  %v2649_v57 = vsel %vm1515_vm4, 1.0, %v3214_v0  ;;  %v2635_v10 = vsel %vm1459_vm5, 1.0, %v3214_v0  ;;  %v2647_v51 = vsel %vm1513_vm8, 1.0, %v3214_v0  ;;  %v4005_v26 = vmul.f32 %v1607_v37, %v3855_v48 }
 0x44c   : > { %vm1463_vm6 = vcmp.ge.f32.partialorder %v3967_v41, %v3832_v30  ;;  %vm1517_vm7 = vcmp.ge.f32.partialorder %v3967_v41, %v3835_v54  ;;  %v1584_v30 = vsub.f32 %v3863_v2, %v3918_v29  ;;  %v1652_v54 = vsub.f32 %v1643_v38, %v3863_v2 }
 0x44d   : > { %v2639_v46 = vsel %vm1463_vm6, 1.0, %v3214_v0  ;;  %v2651_v28 = vsel %vm1517_vm7, 1.0, %v3214_v0  ;;  %v1581_v3 = vsub.f32 %v3886_v14, %v3918_v29  ;;  %v1649_v56 = vsub.f32 %v1643_v38, %v3886_v14 }
 0x44e   : > { %1703 = vrot.lane.b32.xlu1 %v1545_v42, %s3216_s22  ;;  %1713 = vrot.lane.b32.xlu0 %v3975_v43, %s3216_s22  ;;  %v3997_v61 = vsub.f32 %v2639_v46, %v2651_v28  ;;  %v1612_v62 = vmul.f32 %v1603_v55, %v1584_v30  ;;  %v4007_v63 = vmul.f32 %v1671_v35, %v1652_v54  ;;  %v1769_v46 = vld [vmem:[#allocation8 + $0x6] ss:$8 sm:$0x7]  ;;  %vm1723_vm11 = vcmask 785408  }
 0x44f   : > { %v1551_v16 = vsub.f32 %v2637_v52, %v2649_v57  ;;  %vm1462_vm9 = vcmp.ge.f32.partialorder %v3942_v25, %v3823_v22  ;;  %vm1516_vm10 = vcmp.ge.f32.partialorder %v3942_v25, %v3826_v59  ;;  %v1590_v47 = vsub.f32 %v3902_v21, %v3918_v29 }
 0x450   : > { %v4022_v48 = vmul.f32 %v1612_v62, %v3893_v34  ;;  %v1609_v4 = vmul.f32 %v1603_v55, %v1581_v3  ;;  %v4024_v17 = vmul.f32 %v1671_v35, %v1649_v56  ;;  %v1549_v5 = vsub.f32 %v2635_v10, %v2647_v51  ;;  %v4067_v51 = vld [vmem:[#allocation8 + $0x19] ss:$8 sm:$0x7] }
 0x451   : > { %v1618_v7 = vmul.f32 %v1603_v55, %v1590_v47  ;;  %v1658_v22 = vsub.f32 %v1643_v38, %v3902_v21  ;;  %v1580_v59 = vsub.f32 %v3851_v44, %v3909_v18  ;;  %v2638_v20 = vsel %vm1462_vm9, 1.0, %v3214_v0 }
 0x452   : > { %1721 = vrot.lane.b32.xlu1 %v1554_v45, %s3216_s22  ;;  %1719 = vrot.lane.b32.xlu0 %v3997_v61, %s3216_s22  ;;  %v4030_v27 = vmul.f32 %v1609_v4, %v1545_v42  ;;  %v1587_v19 = vsub.f32 %v3932_v8, %v3918_v29  ;;  %v1655_v34 = vsub.f32 %v1643_v38, %v3932_v8  ;;  %v2650_v50 = vsel %vm1516_vm10, 1.0, %v3214_v0 }
 0x453   : > { %v4036_v31 = vmul.f32 %v1618_v7, %v1554_v45  ;;  %v4038_v36 = vmul.f32 %v1671_v35, %v1658_v22  ;;  %v1608_v24 = vmul.f32 %v3987_v23, %v1580_v59  ;;  %v1582_v0 = vsub.f32 %v3861_v1, %v3868_v9  ;;  %v4052_v45 = vld [vmem:[#allocation8 + $0x18] ss:$8 sm:$0x7] }
 0x454   : > { %v1615_v37 = vmul.f32 %v1603_v55, %v1587_v19  ;;  %v4043_v42 = vmul.f32 %v1671_v35, %v1655_v34  ;;  %v1583_v38 = vsub.f32 %v3884_v6, %v3909_v18  ;;  %v1788_v28 = vrot.slane %v1769_v46, %v3829_v32  ;;  %v4059_v35 = vld [vmem:[#allocation8 + $0x7] ss:$8 sm:$0x7] }
 0x455   : > { %v4046_v29 = vmul.f32 %v1608_v24, %v3880_v58  ;;  %v1552_v52 = vsub.f32 %v2638_v20, %v2650_v50  ;;  %v1586_v55 = vsub.f32 %v3922_v40, %v3909_v18  ;;  %v1856_v58 = vrot.slane %v4052_v45, %v3829_v32 }
 0x456   : > { %1715 = vrot.lane.b32.xlu1 %v1551_v16, %s3216_s22  ;;  %1711 = vrot.lane.b32.xlu0 %v1549_v5, %s3216_s22  ;;  %v4055_v57 = vmul.f32 %v1615_v37, %v1551_v16  ;;  %v1610_v30 = vmul.f32 %v3872_v11, %v1582_v0  ;;  %v1611_v54 = vmul.f32 %v3987_v23, %v1583_v38 }
 0x457   : > { %v1588_v10 = vsub.f32 %v3942_v25, %v3868_v9  ;;  %v1816_v62 = vrot.slane %v4059_v35, %v3829_v32  ;;  %v1614_v3 = vmul.f32 %v3987_v23, %v1586_v55  ;;  %v1585_v56 = vsub.f32 %v3900_v39, %v3868_v9 }
 0x458   : > { %v1884_v16 = vrot.slane %v4067_v51, %v3829_v32  ;;  %v4078_v47 = vmul.f32 %v1610_v30, %v3924_v13  ;;  %v4081_v4 = vmul.f32 %v1611_v54, %v3926_v60  ;;  %v1797_v22 = vsub.f32 %v3863_v2, %v1788_v28 }
 0x459   : > { %v1616_v7 = vmul.f32 %v3872_v11, %v1588_v10  ;;  %v4086_v59 = vmul.f32 %v1614_v3, %v3975_v43  ;;  %v1613_v20 = vmul.f32 %v3872_v11, %v1585_v56  ;;  %v1865_v9 = vsub.f32 %v1856_v58, %v3863_v2 }
 0x45a   : > { %1717 = vrot.lane.b32.xlu1 %v1552_v52, %s3216_s22  ;;  %v1825_v32 = vmul.f32 %v1816_v62, %v1797_v22  ;;  %v1794_v13 = vsub.f32 %v3886_v14, %v1788_v28  ;;  %v1862_v34 = vsub.f32 %v1856_v58, %v3886_v14  ;;  %v1803_v43 = vsub.f32 %v3902_v21, %v1788_v28 }
 0x45b   : > { %v4090_v19 = vmul.f32 %v1616_v7, %v1552_v52  ;;  %v4094_v60 = vmul.f32 %v1613_v20, %v1549_v5  ;;  %v4096_v50 = vmul.f32 %v1884_v16, %v1865_v9  ;;  %v1871_v11 = vsub.f32 %v1856_v58, %v3902_v21 }
 0x45c   : > { %v4098_v24 = vmul.f32 %v1816_v62, %v1794_v13  ;;  %v4100_v37 = vmul.f32 %v1884_v16, %v1862_v34  ;;  %v4104_v2 = vmul.f32 %v1816_v62, %v1803_v43  ;;  %v1800_v38 = vsub.f32 %v3932_v8, %v1788_v28 }
 0x45d   : > { %v4106_v0 = vmul.f32 %v1884_v16, %v1871_v11  ;;  %v1868_v14 = vsub.f32 %v1856_v58, %v3932_v8  ;;  %v4116_v55 = vrot.slane %v3940_v33, %v3436_v12  ;;  %v4122_v54 = vrot.slane %v3946_v53, %v3436_v12 }
 0x45e   : > { %v4110_v5 = vmul.f32 %v1816_v62, %v1800_v38  ;;  %v4125_v28 = vrot.slane %v1769_v46, %v3436_v12  ;;  %v4129_v8 = vrot.slane %v3940_v33, %v3439_v15  ;;  %v4146_v20 = vrot.slane %v3946_v53, %v3439_v15 }
 0x45f   : > { %v4112_v52 = vmul.f32 %v1884_v16, %v1868_v14  ;;  %v1647_v21 = vsub.f32 %v4116_v55, %v3837_v49  ;;  %v1650_v58 = vsub.f32 %v4116_v55, %v3861_v1  ;;  %v4138_v16 = vrot.slane %v4059_v35, %v3436_v12 }
 0x460   : > { %v1651_v10 = vsub.f32 %v4129_v8, %v3884_v6  ;;  %v1792_v7 = vsub.f32 %v3837_v49, %v4125_v28  ;;  %v4149_v13 = vrot.slane %v1769_v46, %v3439_v15  ;;  %v1648_v38 = vsub.f32 %v4129_v8, %v3851_v44 }
 0x461   : > { %4497 = vst [vmem:[#allocation21_spill] sm:$0xff] %v4112_v52  ;;  %v1675_v3 = vmul.f32 %v4122_v54, %v1647_v21  ;;  %v1678_v43 = vmul.f32 %v4122_v54, %v1650_v58  ;;  %v1795_v53 = vsub.f32 %v3861_v1, %v4125_v28 }
 0x462   : > { %v1679_v11 = vmul.f32 %v4146_v20, %v1651_v10  ;;  %v1796_v46 = vsub.f32 %v3884_v6, %v4149_v13  ;;  %v1820_v21 = vmul.f32 %v4138_v16, %v1792_v7  ;;  %v1676_v7 = vmul.f32 %v4146_v20, %v1648_v38 }
 0x4b4   : > { %v1700_v30 = vpop.permute.xlu0 %1699 }
 0x4b8   : > { %v1710_v62 = vpop.permute.xlu1 %1709  ;;  %v1702_v56 = vpop.permute.xlu0 %1701 }
 0x4b9   : > { %v1749_v33 = vmul.f32 %v1710_v62, %v4007_v63  ;;  %v1724_v22 = vsel %vm1723_vm11, %v1700_v30, %v1702_v56 }
 0x4ba   : > { %v1744_v9 = vmul.f32 %v1724_v22, %v1675_v3 }
 0x4bb   : > { %v1761_v34 = vadd.f32 %v1749_v33, %v4022_v48 }
 0x4bc   : > { %v1706_v63 = vpop.permute.xlu1 %1705  ;;  %v1708_v14 = vpop.permute.xlu0 %1707  ;;  %v1756_v30 = vadd.f32 %v1744_v9, %v4005_v26  ;;  %v4170_v26 = vrot.slane %v4059_v35, %v3439_v15  ;;  %v1793_v9 = vsub.f32 %v3851_v44, %v4149_v13 }
 0x4bd   : > { %v1726_v48 = vsel %vm1723_vm11, %v1706_v63, %v1708_v14  ;;  %v1727_v58 = vsel %vm1723_vm11, %v1708_v14, %v1710_v62  ;;  %1922 = vrot.lane.b32.xlu1 %v1761_v34, %s3216_s22  ;;  %v4165_v10 = vmul.f32 %v1825_v32, %v1761_v34 }
 0x4be   : > { %v1747_v3 = vmul.f32 %v1726_v48, %v1678_v43  ;;  %v1748_v33 = vmul.f32 %v1727_v58, %v1679_v11  ;;  %1912 = vrot.lane.b32.xlu0 %v1756_v30, %s3216_s22  ;;  %v4172_v22 = vmul.f32 %v1820_v21, %v1756_v30  ;;  %v1823_v43 = vmul.f32 %v4138_v16, %v1795_v53 }
 0x4bf   : > { %v1824_v11 = vmul.f32 %v4170_v26, %v1796_v46  ;;  %v1653_v53 = vsub.f32 %v4116_v55, %v3900_v39 }
 0x4c0   : > { %v1704_v62 = vpop.permute.xlu1 %1703  ;;  %v1714_v63 = vpop.permute.xlu0 %1713  ;;  %v1759_v32 = vadd.f32 %v1747_v3, %v4078_v47  ;;  %v1760_v34 = vadd.f32 %v1748_v33, %v4081_v4  ;;  %v1654_v4 = vsub.f32 %v4129_v8, %v3922_v40 }
 0x4c1   : > { %v1725_v35 = vsel %vm1723_vm11, %v1702_v56, %v1704_v62  ;;  %v1746_v14 = vmul.f32 %v1704_v62, %v4024_v17  ;;  %v1821_v56 = vmul.f32 %v4170_v26, %v1793_v9  ;;  %v1681_v62 = vmul.f32 %v4122_v54, %v1653_v53 }
 0x4c2   : > { %v1745_v30 = vmul.f32 %v1725_v35, %v1676_v7  ;;  %v4183_v21 = vmul.f32 %v1823_v43, %v1759_v32  ;;  %v4185_v38 = vmul.f32 %v1824_v11, %v1760_v34  ;;  %v1799_v7 = vsub.f32 %v3922_v40, %v4149_v13 }
 0x4c3   : > { %v1758_v48 = vadd.f32 %v1746_v14, %v4030_v27  ;;  %v1657_v27 = vsub.f32 %v4129_v8, %v3967_v41  ;;  %v1682_v8 = vmul.f32 %v4146_v20, %v1654_v4 }
 0x4c4   : > { %v1722_v58 = vpop.permute.xlu1 %1721  ;;  %v1720_v52 = vpop.permute.xlu0 %1719  ;;  %v1757_v47 = vadd.f32 %v1745_v30, %v4046_v29  ;;  %v1589_v29 = vsub.f32 %v3967_v41, %v3909_v18  ;;  %v1798_v18 = vsub.f32 %v3900_v39, %v4125_v28 }
 0x4c5   : > { %v1755_v17 = vmul.f32 %v1722_v58, %v4038_v36  ;;  %1916 = vrot.lane.b32.xlu1 %v1758_v48, %s3216_s22  ;;  %v4197_v46 = vmul.f32 %v4098_v24, %v1758_v48  ;;  %v1656_v36 = vsub.f32 %v4116_v55, %v3942_v25  ;;  %v1731_v24 = vsel %vm1723_vm11, %v1720_v52, %v1722_v58 }
 0x4c6   : > { %1914 = vrot.lane.b32.xlu0 %v1757_v47, %s3216_s22  ;;  %v4204_v3 = vmul.f32 %v1821_v56, %v1757_v47  ;;  %v1685_v14 = vmul.f32 %v4146_v20, %v1657_v27  ;;  %v1617_v58 = vmul.f32 %v3987_v23, %v1589_v29  ;;  %v1826_v56 = vmul.f32 %v4138_v16, %v1798_v18  ;;  %v2918_v27 = vld [vmem:[#allocation11 + $0x78] sm:$0xff]   ;;  %v1981_v18 = vld [vmem:[#allocation8 + $0x1a] ss:$8 sm:$0x3] }
 0x4c7   : > { %v1767_v33 = vadd.f32 %v1755_v17, %v4036_v31  ;;  %v1684_v4 = vmul.f32 %v4122_v54, %v1656_v36  ;;  %v2919_v29 = vld [vmem:[#allocation11 + $0x38] sm:$0xff]   ;;  %2703 = vmatprep.subr.bf16.mxu0 %v2918_v27  ;;  %v2924_v36 = vld [vmem:[#allocation11 + $0x60] sm:$0xff]  }
 0x4c8   : > { %v1716_v9 = vpop.permute.xlu1 %1715  ;;  %v1712_v43 = vpop.permute.xlu0 %1711  ;;  %v1629_v54 = vmul.f32 %v1617_v58, %v3997_v61  ;;  %v2920_v61 = vld [vmem:[#allocation11 + $0x70] sm:$0xff]   ;;  %2704 = vmatpush3.bf16.msra.mxu0 %v2919_v29  ;;  %v2927_v58 = vld [vmem:[#allocation11 + $0x18] sm:$0xff]  }
 0x4c9   : > { %v1729_v11 = vsel %vm1723_vm11, %v1714_v63, %v1716_v9  ;;  %v1752_v31 = vmul.f32 %v1716_v9, %v4043_v42  ;;  %v1728_v55 = vsel %vm1723_vm11, %v1712_v43, %v1714_v63  ;;  %1918 = vrot.lane.b32.xlu1 %v1759_v32, %s3216_s22  ;;  %v4221_v35 = vmul.f32 %v4104_v2, %v1767_v33 }
 0x4ca   : > { %v1751_v30 = vmul.f32 %v1729_v11, %v1682_v8  ;;  %v1750_v48 = vmul.f32 %v1728_v55, %v1681_v62  ;;  %1920 = vrot.lane.b32.xlu0 %v1760_v34, %s3216_s22  ;;  %v1827_v42 = vmul.f32 %v4170_v26, %v1799_v7  ;;  %v1801_v63 = vsub.f32 %v3942_v25, %v4125_v28  ;;  %v2925_v7 = vld [vmem:[#allocation11 + $0x20] sm:$0xff]  }
 0x4cb   : > { %v1764_v47 = vadd.f32 %v1752_v31, %v4055_v57  ;;  %v1754_v32 = vmul.f32 %v1731_v24, %v1685_v14  ;;  %2705 = vmatprep.subr.bf16.mxu0 %v2920_v61  ;;  %v2926_v24 = vld [vmem:[#allocation11 + $0x58] sm:$0xff]   ;;  %v4259_v62 = vrot.slane %v4052_v45, %v3436_v12  ;;  %v4263_v43 = vrot.slane %v4052_v45, %v3439_v15 }
 0x4cc   : > { %v1718_v2 = vpop.permute.xlu1 %1717  ;;  %v1763_v53 = vadd.f32 %v1751_v30, %v4086_v59  ;;  %v1762_v20 = vadd.f32 %v1750_v48, %v4094_v60  ;;  %v4268_v31 = vrot.slane %v4067_v51, %v3436_v12  ;;  %v4271_v55 = vrot.slane %v1981_v18, %v3439_v15 }
 0x4cd   : > { %v1730_v34 = vsel %vm1723_vm11, %v1718_v2, %v1720_v52  ;;  %1934 = vrot.lane.b32.xlu1 %v1767_v33, %s3216_s22  ;;  %v4237_v23 = vmul.f32 %v4110_v5, %v1764_v47  ;;  %v4245_v59 = vadd.f32 %v1754_v32, %v1629_v54  ;;  %v1829_v52 = vmul.f32 %v4138_v16, %v1801_v63  ;;  %v2921_v33 = vld [vmem:[#allocation11 + $0x30] sm:$0xff]   ;;  %v2923_v16 = vld [vmem:[#allocation11 + $0x28] sm:$0xff]  }
 0x4ce   : > { %v1753_v57 = vmul.f32 %v1730_v34, %v1684_v4  ;;  %1926 = vrot.lane.b32.xlu0 %v1763_v53, %s3216_s22  ;;  %v4241_v28 = vmul.f32 %v1827_v42, %v1763_v53  ;;  %v4243_v17 = vmul.f32 %v1826_v56, %v1762_v20  ;;  %2706 = vmatpush3.bf16.msra.mxu0 %v2921_v33  ;;  %v2929_v54 = vld [vmem:[#allocation11 + $0x10] sm:$0xff]  }
 0x4cf   : > { %v1860_v14 = vsub.f32 %v4259_v62, %v3837_v49  ;;  %v1861_v45 = vsub.f32 %v4263_v43, %v3851_v44  ;;  %v4280_v30 = vrot.slane %v4067_v51, %v3439_v15  ;;  %v4283_v48 = vrot.slane %v1981_v18, %v3436_v12 }
 0x4d0   : > { %v1765_v60 = vadd.f32 %v1753_v57, %v4090_v19  ;;  %v2922_v19 = vld [vmem:[#allocation11 + $0x68] sm:$0xff]   ;;  %v1863_v63 = vsub.f32 %v4259_v62, %v3861_v1  ;;  %v1864_v32 = vsub.f32 %v4263_v43, %v3884_v6  ;;  %v2000_v51 = vsub.f32 %v3851_v44, %v4271_v55 }
 0x4d1   : > { %1928 = vrot.lane.b32.xlu1 %v1764_v47, %s3216_s22  ;;  %2707 = vmatprep.subr.bf16.mxu0 %v2922_v19  ;;  %v2928_v47 = vld [vmem:[#allocation11 + $0x50] sm:$0xff]   ;;  %v1889_v56 = vmul.f32 %v4280_v30, %v1861_v45  ;;  %v1999_v57 = vsub.f32 %v3837_v49, %v4283_v48 }
 0x4d2   : > { %1932 = vrot.lane.b32.xlu0 %v4245_v59, %s3216_s22  ;;  %v4252_v5 = vmul.f32 %v1829_v52, %v1765_v60  ;;  %2708 = vmatpush3.bf16.msra.mxu0 %v2923_v16  ;;  %v1891_v19 = vmul.f32 %v4268_v31, %v1863_v63  ;;  %v1892_v16 = vmul.f32 %v4280_v30, %v1864_v32 }
 0x4d3   : > { %2709 = vmatprep.subr.bf16.mxu0 %v2924_v36 }
 0x4d5   : > { %1930 = vrot.lane.b32.xlu1 %v1765_v60, %s3216_s22  ;;  %v2930_v60 = vld [vmem:[#allocation11 + $0x48] sm:$0xff]  }
 0x4d6   : > { %1924 = vrot.lane.b32.xlu0 %v1762_v20, %s3216_s22  ;;  %2710 = vmatpush3.bf16.msra.mxu0 %v2925_v7  ;;  %v1888_v20 = vmul.f32 %v4268_v31, %v1860_v14  ;;  %v2001_v7 = vsub.f32 %v3861_v1, %v4283_v48 }
 0x4d7   : > { %2711 = vmatprep.subr.bf16.mxu0 %v2926_v24 }
 0x4da   : > { %2712 = vmatpush3.bf16.msra.mxu0 %v2927_v58 }
 0x4db   : > { %2713 = vmatprep.subr.bf16.mxu0 %v2928_v47 }
 0x4de   : > { %2714 = vmatpush3.bf16.msra.mxu0 %v2929_v54 }
 0x4df   : > { %2715 = vmatprep.subr.bf16.mxu0 %v2930_v60 }
 0x52f   : > { %v1923_v9 = vpop.permute.xlu1 %1922 }
 0x530   : > { %v1961_v8 = vmul.f32 %v1923_v9, %v4096_v50  ;;  %v1913_v50 = vpop.permute.xlu0 %1912 }
 0x532   : > { %v1973_v11 = vadd.f32 %v1961_v8, %v4165_v10  ;;  %v1983_v10 = vld [vmem:[#allocation8 + $0x1b] ss:$8 sm:$0x3] }
 0x533   : > { %v4286_v4 = vrot.slane %v1983_v10, %v3439_v15  ;;  %v4295_v2 = vrot.slane %v1983_v10, %v3436_v12 }
 0x534   : > { %2094 = vrot.lane.b32.xlu1 %v1973_v11, %s3216_s22 }
 0x535   : > { %v2019_v36 = vmul.f32 %v4286_v4, %v2000_v51  ;;  %v2018_v11 = vmul.f32 %v4295_v2, %v1999_v57  ;;  %v2020_v32 = vmul.f32 %v4295_v2, %v2001_v7  ;;  %v1870_v57 = vsub.f32 %v4263_v43, %v3967_v41 }
 0x537   : > { %v1917_v42 = vpop.permute.xlu1 %1916  ;;  %v1898_v7 = vmul.f32 %v4280_v30, %v1870_v57 }
 0x538   : > { %v1958_v53 = vmul.f32 %v1917_v42, %v4100_v37  ;;  %v1915_v34 = vpop.permute.xlu0 %1914 }
 0x539   : > { %v1936_v52 = vsel %vm1723_vm11, %v1913_v50, %v1915_v34  ;;  %v1937_v27 = vsel %vm1723_vm11, %v1915_v34, %v1917_v42  ;;  %v2932_v42 = vld [vmem:[#allocation11 + $0x40] sm:$0xff]  }
 0x53a   : > { %v1970_v29 = vadd.f32 %v1958_v53, %v4197_v46  ;;  %v1956_v61 = vmul.f32 %v1936_v52, %v1888_v20  ;;  %v1957_v33 = vmul.f32 %v1937_v27, %v1889_v56  ;;  %v2002_v46 = vsub.f32 %v3884_v6, %v4271_v55  ;;  %v2933_v34 = vld [vmem:[#allocation11] sm:$0xff]  }
 0x53b   : > { %v1919_v37 = vpop.permute.xlu1 %1918  ;;  %v1869_v52 = vsub.f32 %v4259_v62, %v3942_v25 }
 0x53c   : > { %2088 = vrot.lane.b32.xlu1 %v1970_v29, %s3216_s22  ;;  %v1921_v24 = vpop.permute.xlu0 %1920  ;;  %v1969_v8 = vadd.f32 %v1957_v33, %v4204_v3  ;;  %v1968_v18 = vadd.f32 %v1956_v61, %v4172_v22  ;;  %v2931_v3 = vld [vmem:[#allocation11 + $0x8] sm:$0xff]   ;;  %v1867_v22 = vsub.f32 %v4263_v43, %v3922_v40  ;;  %v2021_v56 = vmul.f32 %v4286_v4, %v2002_v46  ;;  %v4498_v29 = vld [vmem:[#allocation21_spill] sm:$0xff] }
 0x53d   : > { %v1938_v50 = vsel %vm1723_vm11, %v1919_v37, %v1921_v24  ;;  %v1939_v14 = vsel %vm1723_vm11, %v1921_v24, %v1923_v9  ;;  %2716 = vmatpush3.bf16.msra.mxu0 %v2931_v3  ;;  %v1866_v43 = vsub.f32 %v4259_v62, %v3900_v39  ;;  %v1802_v37 = vsub.f32 %v3967_v41, %v4149_v13 }
 0x53e   : > { %v1959_v45 = vmul.f32 %v1938_v50, %v1891_v19  ;;  %v1960_v10 = vmul.f32 %v1939_v14, %v1892_v16  ;;  %v4318_v58 = vmul.f32 %v2019_v36, %v1969_v8  ;;  %2086 = vrot.lane.b32.xlu0 %v1969_v8, %s3216_s22  ;;  %v4321_v47 = vmul.f32 %v2018_v11, %v1968_v18 }
 0x53f   : > { %v1935_v63 = vpop.permute.xlu1 %1934  ;;  %2717 = vmatprep.subr.bf16.mxu0 %v2932_v42  ;;  %v2005_v62 = vsub.f32 %v3942_v25, %v4283_v48  ;;  %v1897_v24 = vmul.f32 %v4268_v31, %v1869_v52  ;;  %v1894_v13 = vmul.f32 %v4268_v31, %v1866_v43  ;;  %v1830_v14 = vmul.f32 %v4170_v26, %v1802_v37 }
 0x540   : > { %v1967_v51 = vmul.f32 %v1935_v63, %v4106_v0  ;;  %v1927_v53 = vpop.permute.xlu0 %1926  ;;  %v1971_v9 = vadd.f32 %v1959_v45, %v4183_v21  ;;  %v1972_v20 = vadd.f32 %v1960_v10, %v4185_v38  ;;  %v1895_v21 = vmul.f32 %v4280_v30, %v1867_v22 }
 0x541   : > { %2718 = vmatpush3.bf16.msra.mxu0 %v2933_v34 }
 0x542   : > { %v1979_v54 = vadd.f32 %v1967_v51, %v4221_v35  ;;  %2090 = vrot.lane.b32.xlu1 %v1971_v9, %s3216_s22  ;;  %v4334_v60 = vmul.f32 %v2020_v32, %v1971_v9  ;;  %v4336_v0 = vmul.f32 %v2021_v56, %v1972_v20  ;;  %2092 = vrot.lane.b32.xlu0 %v1972_v20, %s3216_s22 }
 0x543   : > { %v1929_v38 = vpop.permute.xlu1 %1928  ;;  %v2004_v35 = vsub.f32 %v3922_v40, %v4271_v55 }
 0x544   : > { %v1941_v27 = vsel %vm1723_vm11, %v1927_v53, %v1929_v38  ;;  %v1964_v61 = vmul.f32 %v1929_v38, %v4498_v29  ;;  %v1933_v33 = vpop.permute.xlu0 %1932 }
 0x545   : > { %v1963_v19 = vmul.f32 %v1941_v27, %v1895_v21  ;;  %v1943_v16 = vsel %vm1723_vm11, %v1933_v33, %v1935_v63  ;;  %v2023_v11 = vmul.f32 %v4286_v4, %v2004_v35  ;;  %v2024_v63 = vmul.f32 %v4295_v2, %v2005_v62 }
 0x546   : > { %v1976_v36 = vadd.f32 %v1964_v61, %v4237_v23  ;;  %2106 = vrot.lane.b32.xlu1 %v1979_v54, %s3216_s22  ;;  %2084 = vrot.lane.b32.xlu0 %v1968_v18, %s3216_s22  ;;  %v1966_v50 = vmul.f32 %v1943_v16, %v1898_v7  ;;  %v2003_v18 = vsub.f32 %v3900_v39, %v4283_v48 }
 0x547   : > { %v1931_v8 = vpop.permute.xlu1 %1930  ;;  %v1975_v46 = vadd.f32 %v1963_v19, %v4241_v28  ;;  %v1842_v28 = vmul.f32 %v1830_v14, %v4245_v59  ;;  %v1985_v59 = vld [vmem:[#allocation8 + $0x1c] ss:$8 sm:$0x3] }
 0x548   : > { %v1942_v23 = vsel %vm1723_vm11, %v1931_v8, %v1933_v33  ;;  %v1925_v30 = vpop.permute.xlu0 %1924  ;;  %v2022_v48 = vmul.f32 %v4295_v2, %v2003_v18  ;;  %v2038_v20 = vrot.slane %v1985_v59, %v3436_v12 }
 0x549   : > { %v1965_v45 = vmul.f32 %v1942_v23, %v1897_v24  ;;  %v1940_v10 = vsel %vm1723_vm11, %v1925_v30, %v1927_v53  ;;  %v2031_v3 = vmul.f32 %v2023_v11, %v1975_v46  ;;  %v4371_v32 = vadd.f32 %v1966_v50, %v1842_v28  ;;  %v1987_v53 = vld [vmem:[#allocation8 + $0x1d] ss:$8 sm:$0x3] }
 0x54a   : > { %v1962_v42 = vmul.f32 %v1940_v10, %v1894_v13  ;;  %2100 = vrot.lane.b32.xlu1 %v1976_v36, %s3216_s22  ;;  %2098 = vrot.lane.b32.xlu0 %v1975_v46, %s3216_s22  ;;  %v2061_v2 = vrot.slane %v1987_v53, %v3439_v15  ;;  %v2047_v54 = vsub.f32 %v2038_v20, %v3861_v1 }
 0x54b   : > { %v1977_v31 = vadd.f32 %v1965_v45, %v4252_v5  ;;  %v2042_v5 = vrot.slane %v1985_v59, %v3439_v15  ;;  %v2057_v43 = vrot.slane %v1987_v53, %v3436_v12  ;;  %v2045_v61 = vsub.f32 %v2038_v20, %v3837_v49 }
 0x54c   : > { %v1974_v26 = vadd.f32 %v1962_v42, %v4243_v17  ;;  %v2006_v49 = vsub.f32 %v3967_v41, %v4271_v55  ;;  %v2049_v42 = vsub.f32 %v2038_v20, %v3900_v39 }
 0x54d   : > { %v4375_v22 = vmul.f32 %v2024_v63, %v1977_v31  ;;  %v2046_v17 = vsub.f32 %v2042_v5, %v3851_v44  ;;  %v2048_v21 = vsub.f32 %v2042_v5, %v3884_v6  ;;  %v2066_v44 = vmul.f32 %v2057_v43, %v2047_v54 }
 0x54e   : > { %2102 = vrot.lane.b32.xlu1 %v1977_v31, %s3216_s22  ;;  %2104 = vrot.lane.b32.xlu0 %v4371_v32, %s3216_s22  ;;  %v4380_v51 = vmul.f32 %v2022_v48, %v1974_v26  ;;  %v2064_v12 = vmul.f32 %v2057_v43, %v2045_v61  ;;  %v2052_v50 = vsub.f32 %v2042_v5, %v3967_v41 }
 0x54f   : > { %v2065_v34 = vmul.f32 %v2061_v2, %v2046_v17  ;;  %v2067_v29 = vmul.f32 %v2061_v2, %v2048_v21  ;;  %v2025_v14 = vmul.f32 %v4286_v4, %v2006_v49  ;;  %v2793_v17 = vpop.f32.mrf.mxu1 }
 0x550   : > { %v2071_v10 = vmul.f32 %v2061_v2, %v2052_v50 }
 0x551   : > { %v2033_v41 = vmul.f32 %v2025_v14, %v4371_v32 }
 0x552   : > { %2096 = vrot.lane.b32.xlu0 %v1974_v26, %s3216_s22  ;;  %v2068_v26 = vmul.f32 %v2057_v43, %v2049_v42 }
 0x5a6   : > { %v2095_v9 = vpop.permute.xlu1 %2094 }
 0x5ae   : > { %v2089_v56 = vpop.permute.xlu1 %2088 }
 0x5b0   : > { %v2087_v57 = vpop.permute.xlu0 %2086 }
 0x5b1   : > { %v2109_v38 = vsel %vm1723_vm11, %v2087_v57, %v2089_v56 }
 0x5b2   : > { %v2125_v52 = vmul.f32 %v2109_v38, %v2065_v34 }
 0x5b4   : > { %v2133_v35 = vadd.f32 %v2125_v52, %v4318_v58  ;;  %v2091_v27 = vpop.permute.xlu1 %2090  ;;  %v2093_v15 = vpop.permute.xlu0 %2092  ;;  %v2050_v58 = vsub.f32 %v2042_v5, %v3922_v40 }
 0x5b5   : > { %v2110_v33 = vsel %vm1723_vm11, %v2091_v27, %v2093_v15  ;;  %v2111_v37 = vsel %vm1723_vm11, %v2093_v15, %v2095_v9 }
 0x5b6   : > { %v2126_v1 = vmul.f32 %v2110_v33, %v2066_v44  ;;  %v2127_v19 = vmul.f32 %v2111_v37, %v2067_v29  ;;  %v2069_v11 = vmul.f32 %v2061_v2, %v2050_v58 }
 0x5b8   : > { %v2134_v6 = vadd.f32 %v2126_v1, %v4334_v60  ;;  %v2135_v16 = vadd.f32 %v2127_v19, %v4336_v0  ;;  %v2107_v36 = vpop.permute.xlu1 %2106  ;;  %v2085_v7 = vpop.permute.xlu0 %2084  ;;  %v2051_v0 = vsub.f32 %v2038_v20, %v3942_v25 }
 0x5b9   : > { %v2108_v62 = vsel %vm1723_vm11, %v2085_v7, %v2087_v57 }
 0x5ba   : > { %v2124_v24 = vmul.f32 %v2108_v62, %v2064_v12  ;;  %v2145_v8 = vpack.c.bf16 %v2135_v16, %v2133_v35  ;;  %v2070_v55 = vmul.f32 %v2057_v43, %v2051_v0 }
 0x5bc   : > { %v2132_v13 = vadd.f32 %v2124_v24, %v4321_v47  ;;  %v2101_v46 = vpop.permute.xlu1 %2100  ;;  %2308 = vmatprep.mubr.bf16.mxu0 %v2145_v8  ;;  %v2099_v60 = vpop.permute.xlu0 %2098 }
 0x5bd   : > { %v2113_v23 = vsel %vm1723_vm11, %v2099_v60, %v2101_v46 }
 0x5be   : > { %v2144_v40 = vpack.c.bf16 %v2134_v6, %v2132_v13  ;;  %v2129_v30 = vmul.f32 %v2113_v23, %v2069_v11 }
 0x5c0   : > { %v2137_v18 = vadd.f32 %v2129_v30, %v2031_v3  ;;  %v2103_v45 = vpop.permute.xlu1 %2102  ;;  %2309 = vmatmul.mubr.bf16.vlgmr.msra.gmra.mxu0 %v2144_v40  ;;  %v2105_v47 = vpop.permute.xlu0 %2104 }
 0x5c1   : > { %v2114_v28 = vsel %vm1723_vm11, %v2103_v45, %v2105_v47  ;;  %v2115_v25 = vsel %vm1723_vm11, %v2105_v47, %v2107_v36 }
 0x5c2   : > { %v2130_v31 = vmul.f32 %v2114_v28, %v2070_v55  ;;  %v2131_v63 = vmul.f32 %v2115_v25, %v2071_v10 }
 0x5c4   : > { %v2138_v4 = vadd.f32 %v2130_v31, %v4375_v22  ;;  %v2139_v3 = vadd.f32 %v2131_v63, %v2033_v41  ;;  %v2097_v48 = vpop.permute.xlu0 %2096  ;;  %v2403_v22 = vpop.f32.mrf.mxu1 }
 0x5c5   : > { %v2112_v59 = vsel %vm1723_vm11, %v2097_v48, %v2099_v60 }
 0x5c6   : > { %v2128_v5 = vmul.f32 %v2112_v59, %v2068_v26  ;;  %v2147_v53 = vpack.c.bf16 %v2139_v3, %v2137_v18 }
 0x5c8   : > { %v2136_v39 = vadd.f32 %v2128_v5, %v4380_v51  ;;  %2316 = vmatprep.mubr.bf16.mxu0 %v2147_v53  ;;  %v2796_v51 = vpop.f32.mrf.mxu1 }
 0x5ca   : > { %v2146_v9 = vpack.c.bf16 %v2138_v4, %v2136_v39  ;;  %v2413_v35 = vpop.f32.mrf.mxu1 }
 0x5cc   : > { %2317 = vmatmul.mubr.bf16.gmra.mxu0 %v2146_v9 }
 0x680   : > { %v2719_v32 = vpop.f32.mrf.mxu0 }
 0x682   : > { %v2720_v2 = vpop.f32.mrf.mxu0 }
 0x683   : > { %v2721_v20 = vadd.f32 %v2720_v2, %v2719_v32 }
 0x684   : > { %v2722_v56 = vpop.f32.mrf.mxu0 }
 0x685   : > { %v2404_v34 = vadd.f32 %v2721_v20, %v2403_v22 }
 0x686   : > { %v2723_v57 = vpop.f32.mrf.mxu0 }
 0x687   : > { %2422 = vst [vmem:[%s414_s24] sm:$0xff] %v2404_v34  ;;  %v2724_v54 = vadd.f32 %v2723_v57, %v2722_v56 }
 0x689   : > { %v2409_v21 = vadd.f32 %v2793_v17, %v2724_v54 }
 0x68b   : > { %2423 = vst [vmem:[%s414_s24 + $0x8] sm:$0xff] %v2409_v21 }
 0x68c   : > { %v2725_v38 = vpop.f32.mrf.mxu0 }
 0x68e   : > { %v2726_v52 = vpop.f32.mrf.mxu0 }
 0x68f   : > { %v2727_v43 = vadd.f32 %v2726_v52, %v2725_v38 }
 0x690   : > { %v2728_v27 = vpop.f32.mrf.mxu0 }
 0x691   : > { %v2414_v44 = vadd.f32 %v2727_v43, %v2413_v35 }
 0x692   : > { %v2729_v29 = vpop.f32.mrf.mxu0 }
 0x693   : > { %2424 = vst [vmem:[%s414_s24 + $0x10] sm:$0xff] %v2414_v44  ;;  %v2730_v15 = vadd.f32 %v2729_v29, %v2728_v27 }
 0x695   : > { %v2419_v61 = vadd.f32 %v2796_v51, %v2730_v15 }
 0x697   : > { %2425 = vst [vmem:[%s414_s24 + $0x18] sm:$0xff] %v2419_v61 }
 0x698   : > { %3135 = shalt.err (!%p3132_p2)
}
 0x699   : > { %s3136_s25 = scalar_lea.hbm %s4422_s23, 512  ;;  %s3140_s21 = scalar_lea.hbm %s4475_s9, 1024 }
 0x69a   : > { %p3137_p3 = scmp.ne.s32.totalorder %s4422_s23, %s3136_s25  ;;  %p3141_p4 = scmp.lt.s32.totalorder %s4422_s23, %s4475_s9 }
 0x69b   : > { %p3142_p9 = scmp.lt.s32.totalorder %s3140_s21, %s3136_s25 }
 0x69c   : > { %p3138_p12 = pnand %p3137_p3, %p3308_p5 }
 0x69d   : > { %p3143_p7 = por %p3142_p9, %p3141_p4 }
 0x69e   : > { %p3139_p10 = pneg %p3138_p12 }
 0x6a0   : > { %p3144_p8 = pnand %p3143_p7, %p3139_p10 }
 0x6a2   : > { %3147 = shalt.err (!%p3144_p8)
}
 0x6a3   : > { %s3218_s11 = smov 128   ;;  %s3219_s16 = smov 8  }
 0x6a4   : > { %2821 = dma.vmem_to_hbm [thread:$0]  (%p3308_p5), %s4417_s27, 512, %s4422_s23, %s4426_s17, %s3218_s11, %s3218_s11, %s3219_s16  }
 0x6a5 PF: > { %p2858_p0 = scmp.ge.s32.totalorder %s3198_s12, 2  ;;  %s2455_s18 = sand.u32 1, %s3186_s30  }
 0x6a6   : > { %s2456_s13 = scalar_lea.sflag [#allocation4], %s2455_s18 }
 0x6a7   : > { %p2843_p11 = pnand %p2858_p0, %p3312_p6 }
 0x6a9   : > { %p2844_p13 = pneg %p2843_p11 }
 0x6ab   : > { %3181 = dma.done.wait (%p2844_p13), %s2456_s13, 512  }
 0x6ac   : > { %3183 = vsyncadd (%p2844_p13), %s2456_s13, 4294966784  ;;  %s4499_s29 = sld [smem:[#allocation19_spill]]  ;;  %p23_p1 = scmp.ge.s32.totalorder %s3295_s15, 4  }
 0x6ad   : > { %s4500_s11 = sld [smem:[#allocation20_spill]]  ;;  %s4501_s30 = smov %s3190_s10 }
 0x6ae   : > { %s4503_s12 = smov %s3295_s15  ;;  %25 = sbr.rel (!%p23_p1) target bundleno = 7 (0x7), region = 138 }
 0x6b2   : > { %s4502_s10 = smov %s4499_s29 }
 0x6b3   :  { %2461 = vsyncpa [#allocation3], 1 }
 0x6b4   :  { %2463 = vsyncpa [#allocation3 + $0x1], 1 }
 0x6b5   :  { %2464 = vsyncpa [#allocation6], 1 }
 0x6b6   :  { %2465 = vsyncpa [#allocation9], 1 }
 0x6b7   :  { %2466 = vsyncpa [#allocation12], 1 }
 0x6b8   :  { %2467 = vsyncpa [#allocation4], 1 }
 0x6b9   :  { %2469 = vsyncpa [#allocation4 + $0x1], 1 }

</bundles_post_ra>
